<compile_context>
chip_gen: v7x
topology: tpu7x:2x2x1
jax: 0.10.0
libtpu: 0.0.40
codegen_flags: <defaults>
</compile_context>

<pallas_src>
from typing import NamedTuple

import jax
import jax.numpy as jnp
from jax.experimental import pallas as pl
from jax.experimental.pallas import tpu as pltpu

NEG_SLOPE = 0.01        # torch.nn.LeakyReLU default negative_slope
EXTRA_PAD = 32          # nn.ZeroPad2d((0, 0, 32, 32)) rows above/below
VIEW_COLS = 64          # output.view(-1, 64)

# Compat shim: newer JAX spells it CompilerParams, older TPUCompilerParams.
_CompilerParams = getattr(pltpu, "CompilerParams", None)
if _CompilerParams is None:  # pragma: no cover
    _CompilerParams = getattr(pltpu, "TPUCompilerParams")


def _conv_out(n):
    """Output size of Conv2d(kernel=3, stride=2, padding=1)."""
    return (n - 1) // 2 + 1


class _LayerGeom(NamedTuple):
    h_in: int
    w_in: int
    c_in: int
    c_out: int
    h_out: int
    w_out: int
    hp: int       # padded rows per sample actually touched (= 2*h_out + 1)
    wc_in: int    # lanes of one input row  = w_in * c_in   ((w, c) ordering)
    wc_out: int   # lanes of one output row = w_out * c_out


def _layer_geom(h_in, w_in, c_in, c_out):
    h_out, w_out = _conv_out(h_in), _conv_out(w_in)
    return _LayerGeom(h_in, w_in, c_in, c_out, h_out, w_out,
                      2 * h_out + 1, w_in * c_in, w_out * c_out)


# ----------------------------------------------------------------------------
# Trace-time weight folding (all tiny; built with jnp so it works under jit)
# ----------------------------------------------------------------------------
def _fold_conv_weight(w_oihw, w_in, w_out):
    """(Cout, Cin, 3, 3) -> (3*w_in*Cin, w_out*Cout).

    Applies the width part of the 3x3/stride-2/pad-1 conv (incl. its zero
    padding) to one gathered row triple; row index = kh*(w_in*Cin) + iw*Cin + ci,
    column index = ow*Cout + co."""
    c_out, c_in = w_oihw.shape[0], w_oihw.shape[1]
    w_k = jnp.transpose(w_oihw, (2, 3, 1, 0)).astype(jnp.float32)  # (3,3,Ci,Co)
    rows = 3 * w_in * c_in
    cols = w_out * c_out
    r = jnp.arange(rows)
    kh = (r // (w_in * c_in))[:, None]
    iw = ((r // c_in) % w_in)[:, None]
    ci = (r % c_in)[:, None]
    c = jnp.arange(cols)
    ow = (c // c_out)[None, :]
    co = (c % c_out)[None, :]
    kw = iw - 2 * ow + 1
    valid = (kw >= 0) & (kw <= 2)
    vals = w_k[kh, jnp.clip(kw, 0, 2), ci, co]
    return jnp.where(valid, vals, 0.0).astype(jnp.float32)


def _fold_head_weight(lin_w, lin_b, g4):
    """Fold NCHW `.view(-1, 64)` + Linear(64, 1) into (Ho4*W4*C4, P4)."""
    p4 = g4.h_out * g4.w_out
    wc4 = g4.wc_out                       # = w_out4 * 64
    c4 = g4.c_out                         # = 64 (== view(-1, 64) width)
    lw = lin_w.reshape(-1).astype(jnp.float32)                   # (64,)
    q = jnp.arange(g4.h_out * wc4)
    hh = q // wc4
    ww = (q % wc4) // c4
    cc = q % c4
    flat = cc * p4 + hh * g4.w_out + ww                          # NCHW flat idx
    j = flat[:, None] - VIEW_COLS * jnp.arange(p4)[None, :]      # (Q, P4)
    hw = jnp.where((j >= 0) & (j < VIEW_COLS),
                   lw[jnp.clip(j, 0, VIEW_COLS - 1)], 0.0).astype(jnp.float32)
    lb = lin_b.reshape(1, 1).astype(jnp.float32)
    return hw, lb


def _const_spec(a):
    zeros = (0,) * a.ndim
    return pl.BlockSpec(a.shape, lambda i, _z=zeros: _z)


# ----------------------------------------------------------------------------
# Fused Pallas kernel: whole Discriminator forward for one batch block
# ----------------------------------------------------------------------------
def _make_kernel(geoms, bb, img_h):
    g4 = geoms[-1]

    def kernel(x_ref,
               fw1_ref, b1_ref, fw2_ref, b2_ref,
               fw3_ref, b3_ref, fw4_ref, b4_ref,
               hw_ref, lb_ref,
               out_ref,
               act1, act2, act3, act4, c4buf):
        acts = (act1, act2, act3, act4)
        fws = (fw1_ref, fw2_ref, fw3_ref, fw4_ref)
        biases = (b1_ref, b2_ref, b3_ref, b4_ref)

        h_val = None
        for l, g in enumerate(geoms):
            act = acts[l]
            # Rebuild the zero-padded input rows for this layer every step so
            # each grid step is independent (safe under megacore "parallel").
            act[...] = jnp.zeros_like(act)
            if l == 0:
                # nn.ZeroPad2d((0,0,32,32)) + conv padding=1 are the zero rows
                # around the raw image rows (padded row = 1 + 32 + ih).
                for b in range(bb):
                    act[pl.ds(b * g.hp + 1 + EXTRA_PAD, img_h), :] = x_ref[b]
            else:
                prev = geoms[l - 1]
                for b in range(bb):
                    act[pl.ds(b * g.hp + 1, g.h_in), :] = (
                        h_val[b * prev.h_out:(b + 1) * prev.h_out, :])

            # Gather with NO selection matmuls: for each sample and kernel row
            # kh, a static stride-2 sublane slice picks padded rows 2*oh + kh;
            # the three slices sit side by side on lanes so a single
            #   (B*Ho, 3*Wi*Ci) @ (3*Wi*Ci, Wo*Co)
            # MXU matmul performs the whole conv for the batch block.
            rows = []
            for b in range(bb):
                taps = [act[pl.ds(b * g.hp + kh, g.h_out, stride=2), :]
                        for kh in range(3)]
                rows.append(jnp.concatenate(taps, axis=1))
            col = rows[0] if bb == 1 else jnp.concatenate(rows, axis=0)

            z = jnp.dot(col, fws[l][...],
                        preferred_element_type=jnp.float32) + biases[l][...]
            h_val = z if l == 3 else jnp.where(z >= 0, z, NEG_SLOPE * z)

        # Head: `.view(-1, 64)` + Linear(64, 1).  Stash the conv4 rows in a
        # tiny scratch, pull each sample's Ho4 rows side by side with
        # stride-Ho4 sublane slices, and contract the whole block against the
        # pre-folded head weight in one matmul -> (B, P4), lane-dense.
        c4buf[...] = h_val                                  # (B*Ho4, W4*C4)
        chunks = [c4buf[pl.ds(h, bb, stride=g4.h_out), :]
                  for h in range(g4.h_out)]
        hin = chunks[0] if g4.h_out == 1 else jnp.concatenate(chunks, axis=1)
        y = jnp.dot(hin, hw_ref[...],
                    preferred_element_type=jnp.float32) + lb_ref[...]
        out_ref[0] = y.astype(out_ref.dtype)

    return kernel


# ----------------------------------------------------------------------------
# Forward pass (single fused pallas_call, batch-blocked grid)
# ----------------------------------------------------------------------------
def discriminator_forward(params, x_nchw, *, batch_block=8):
    n, cin, height, width = x_nchw.shape
    assert cin == 1, "Discriminator expects a single input channel"

    g1 = _layer_geom(height + 2 * EXTRA_PAD, width, 1, 8)
    g2 = _layer_geom(g1.h_out, g1.w_out, g1.c_out, 16)
    g3 = _layer_geom(g2.h_out, g2.w_out, g2.c_out, 32)
    g4 = _layer_geom(g3.h_out, g3.w_out, g3.c_out, 64)
    geoms = (g1, g2, g3, g4)
    p4 = g4.h_out * g4.w_out

    # Batch blocking: stack `bb` samples along the matmul M dimension per grid
    # step; pad the batch to a whole number of blocks (padded rows sliced off).
    bb = max(1, min(batch_block, n))
    nblocks = pl.cdiv(n, bb)
    n_pad = nblocks * bb

    x = x_nchw[:, 0, :, :].astype(jnp.float32)          # (n, H, W), lane-dense
    if n_pad != n:
        x = jnp.pad(x, ((0, n_pad - n), (0, 0), (0, 0)))

    # Trace-time folded constants (a few KB total; resident in VMEM).
    fws, bs = [], []
    for g, wk, bk in zip(geoms,
                         ("conv1_w", "conv2_w", "conv3_w", "conv4_w"),
                         ("conv1_b", "conv2_b", "conv3_b", "conv4_b")):
        fws.append(_fold_conv_weight(params[wk], g.w_in, g.w_out))
        bs.append(jnp.tile(params[bk].astype(jnp.float32),
                           g.w_out).reshape(1, g.wc_out))
    hw, lb = _fold_head_weight(params["lin_w"], params["lin_b"], g4)

    consts = [fws[0], bs[0], fws[1], bs[1], fws[2], bs[2], fws[3], bs[3],
              hw, lb]

    kernel = _make_kernel(geoms, bb, height)

    out = pl.pallas_call(
        kernel,
        out_shape=jax.ShapeDtypeStruct((nblocks, bb, p4), jnp.float32),
        grid=(nblocks,),
        in_specs=([pl.BlockSpec((bb, height, width), lambda i: (i, 0, 0))]
                  + [_const_spec(a) for a in consts]),
        out_specs=pl.BlockSpec((1, bb, p4), lambda i: (i, 0, 0)),
        scratch_shapes=(
            [pltpu.VMEM((bb * g.hp, g.wc_in), jnp.float32) for g in geoms]
            + [pltpu.VMEM((bb * g4.h_out, g4.wc_out), jnp.float32)]),
        compiler_params=_CompilerParams(dimension_semantics=("parallel",)),
    )(x, *consts)

    out = out.reshape(n_pad, p4)[:n]
    return out.reshape(n * p4, 1)


# ----------------------------------------------------------------------------
# Deterministic synthetic parameters + plain-JAX reference (for validation)
# ----------------------------------------------------------------------------
def init_params(key):
    ks = jax.random.split(key, 10)

    def nrm(k, shape, scale=0.1):
        return (scale * jax.random.normal(k, shape)).astype(jnp.float32)

    return {
        "conv1_w": nrm(ks[0], (8, 1, 3, 3)),   "conv1_b": nrm(ks[1], (8,)),
        "conv2_w": nrm(ks[2], (16, 8, 3, 3)),  "conv2_b": nrm(ks[3], (16,)),
        "conv3_w": nrm(ks[4], (32, 16, 3, 3)), "conv3_b": nrm(ks[5], (32,)),
        "conv4_w": nrm(ks[6], (64, 32, 3, 3)), "conv4_b": nrm(ks[7], (64,)),
        "lin_w":   nrm(ks[8], (1, 64)),        "lin_b":   nrm(ks[9], (1,)),
    }


def reference_forward(params, x_nchw):
    """Plain-JAX (XLA) reference matching the PyTorch module."""
    x = jnp.pad(x_nchw, ((0, 0), (0, 0), (EXTRA_PAD, EXTRA_PAD), (0, 0)))

    def conv(x, w, b, act):
        y = jax.lax.conv_general_dilated(
            x, w, window_strides=(2, 2), padding=((1, 1), (1, 1)),
            dimension_numbers=("NCHW", "OIHW", "NCHW"),
            precision=jax.lax.Precision.HIGHEST)
        y = y + b[None, :, None, None]
        return jnp.where(y >= 0, y, NEG_SLOPE * y) if act else y

    x = conv(x, params["conv1_w"], params["conv1_b"], True)
    x = conv(x, params["conv2_w"], params["conv2_b"], True)
    x = conv(x, params["conv3_w"], params["conv3_b"], True)
    x = conv(x, params["conv4_w"], params["conv4_b"], False)
    x = x.reshape(-1, VIEW_COLS)
    return jnp.dot(x, params["lin_w"].T,
                   precision=jax.lax.Precision.HIGHEST) + params["lin_b"][None, :]


if __name__ == "__main__":
    key = jax.random.PRNGKey(0)
    pkey, xkey = jax.random.split(key)
    params = init_params(pkey)

    # (N=2, C=1, H=8, W=8): ZeroPad2d -> H=72; four stride-2 convs ->
    # (2, 64, 5, 1); view(-1, 64) -> (10, 64); Linear -> (10, 1).
    x = jax.random.normal(xkey, (2, 1, 8, 8), dtype=jnp.float32)

    fwd = jax.jit(discriminator_forward)
    out = fwd(params, x)
    jax.block_until_ready(out)

    ref = reference_forward(params, x)
    assert out.shape == (10, 1) and ref.shape == (10, 1), (out.shape, ref.shape)
    err = float(jnp.max(jnp.abs(out - ref)))
    # The reference runs at Precision.HIGHEST; the kernel's f32 MXU matmuls run
    # at the hardware default precision, so allow a small margin for that while
    # still catching any layout/indexing bug (those show up as O(0.1..1) errors).
    assert err < 2e-2, f"mismatch vs reference: max abs err {err}"
    print("KERNEL_OK")
</pallas_src>

<mosaic_0001>
module attributes {stable_mosaic.version = 11 : i64} {
  func.func private @main(%arg0: i32) attributes {dimension_semantics = [#tpu.dimension_semantics<core_parallel>], iteration_bounds = array<i64: 2>, tpu.core_type = #tpu.core_type<sc_scalar_subcore>, window_params = []} {
    return
  }
}

module attributes {stable_mosaic.version = 11 : i64} {
  func.func private @main(%arg0: i32) attributes {dimension_semantics = [#tpu.dimension_semantics<core_parallel>], iteration_bounds = array<i64: 2>, tpu.core_type = #tpu.core_type<sc_scalar_subcore>, window_params = []} {
    return
  }
}

module attributes {stable_mosaic.version = 11 : i64} {
  func.func @kernel(%arg0: i32, %arg1: memref<2x8x8xf32, #tpu.memory_space<vmem>>, %arg2: memref<24x32xf32, #tpu.memory_space<vmem>>, %arg3: memref<1x32xf32, #tpu.memory_space<vmem>>, %arg4: memref<96x32xf32, #tpu.memory_space<vmem>>, %arg5: memref<1x32xf32, #tpu.memory_space<vmem>>, %arg6: memref<96x32xf32, #tpu.memory_space<vmem>>, %arg7: memref<1x32xf32, #tpu.memory_space<vmem>>, %arg8: memref<96x64xf32, #tpu.memory_space<vmem>>, %arg9: memref<1x64xf32, #tpu.memory_space<vmem>>, %arg10: memref<320x5xf32, #tpu.memory_space<vmem>>, %arg11: memref<1x1xf32, #tpu.memory_space<vmem>>, %arg12: memref<1x2x5xf32, #tpu.memory_space<vmem>>, %arg13: memref<146x8xf32, #tpu.memory_space<vmem>>, %arg14: memref<74x32xf32, #tpu.memory_space<vmem>>, %arg15: memref<38x32xf32, #tpu.memory_space<vmem>>, %arg16: memref<22x32xf32, #tpu.memory_space<vmem>>, %arg17: memref<10x64xf32, #tpu.memory_space<vmem>>) attributes {dimension_semantics = [#tpu.dimension_semantics<parallel>], iteration_bounds = array<i64: 1>, scalar_prefetch = 0 : i64, scratch_operands = 5 : i64, tpu.core_type = #tpu.core_type<tc>, window_params = [{transform_indices = @transform_0, window_bounds = array<i64: 2, 8, 8>}, {pipeline_mode = #tpu.pipeline_mode<synchronous>, transform_indices = @transform_1, window_bounds = array<i64: 24, 32>}, {pipeline_mode = #tpu.pipeline_mode<synchronous>, transform_indices = @transform_2, window_bounds = array<i64: 1, 32>}, {pipeline_mode = #tpu.pipeline_mode<synchronous>, transform_indices = @transform_3, window_bounds = array<i64: 96, 32>}, {pipeline_mode = #tpu.pipeline_mode<synchronous>, transform_indices = @transform_4, window_bounds = array<i64: 1, 32>}, {pipeline_mode = #tpu.pipeline_mode<synchronous>, transform_indices = @transform_5, window_bounds = array<i64: 96, 32>}, {pipeline_mode = #tpu.pipeline_mode<synchronous>, transform_indices = @transform_6, window_bounds = array<i64: 1, 32>}, {pipeline_mode = #tpu.pipeline_mode<synchronous>, transform_indices = @transform_7, window_bounds = array<i64: 96, 64>}, {pipeline_mode = #tpu.pipeline_mode<synchronous>, transform_indices = @transform_8, window_bounds = array<i64: 1, 64>}, {pipeline_mode = #tpu.pipeline_mode<synchronous>, transform_indices = @transform_9, window_bounds = array<i64: 320, 5>}, {pipeline_mode = #tpu.pipeline_mode<synchronous>, transform_indices = @transform_10, window_bounds = array<i64: 1, 1>}, {transform_indices = @transform_11, window_bounds = array<i64: 1, 2, 5>}]} {
    %cst = arith.constant 0.000000e+00 : f32
    %0 = vector.broadcast %cst : f32 to vector<146x8xf32>
    %c0 = arith.constant 0 : index
    %c0_0 = arith.constant 0 : index
    %1 = vector.load %arg13[%c0, %c0_0] : memref<146x8xf32, #tpu.memory_space<vmem>>, vector<146x8xf32>
    tpu.vector_store %arg13[%c0, %c0_0], %0 {strides = array<i32>} : memref<146x8xf32, #tpu.memory_space<vmem>>, vector<146x8xf32>,
    %c0_1 = arith.constant 0 : index
    %c0_2 = arith.constant 0 : index
    %c0_3 = arith.constant 0 : index
    %2 = vector.load %arg1[%c0_1, %c0_2, %c0_3] : memref<2x8x8xf32, #tpu.memory_space<vmem>>, vector<1x8x8xf32>
    %3 = vector.shape_cast %2 : vector<1x8x8xf32> to vector<8x8xf32>
    %c33 = arith.constant 33 : index
    %c0_4 = arith.constant 0 : index
    %4 = vector.load %arg13[%c33, %c0_4] : memref<146x8xf32, #tpu.memory_space<vmem>>, vector<8x8xf32>
    tpu.vector_store %arg13[%c33, %c0_4], %3 {strides = array<i32>} : memref<146x8xf32, #tpu.memory_space<vmem>>, vector<8x8xf32>,
    %c1 = arith.constant 1 : index
    %c0_5 = arith.constant 0 : index
    %c0_6 = arith.constant 0 : index
    %5 = vector.load %arg1[%c1, %c0_5, %c0_6] : memref<2x8x8xf32, #tpu.memory_space<vmem>>, vector<1x8x8xf32>
    %6 = vector.shape_cast %5 : vector<1x8x8xf32> to vector<8x8xf32>
    %c106 = arith.constant 106 : index
    %c0_7 = arith.constant 0 : index
    %7 = vector.load %arg13[%c106, %c0_7] : memref<146x8xf32, #tpu.memory_space<vmem>>, vector<8x8xf32>
    tpu.vector_store %arg13[%c106, %c0_7], %6 {strides = array<i32>} : memref<146x8xf32, #tpu.memory_space<vmem>>, vector<8x8xf32>,
    %c0_8 = arith.constant 0 : index
    %c0_9 = arith.constant 0 : index
    %8 = tpu.strided_load %arg13[%c0_8, %c0_9] {strides = array<i32: 2, 1>} : memref<146x8xf32, #tpu.memory_space<vmem>>, vector<36x8xf32>
    %c1_10 = arith.constant 1 : index
    %c0_11 = arith.constant 0 : index
    %9 = tpu.strided_load %arg13[%c1_10, %c0_11] {strides = array<i32: 2, 1>} : memref<146x8xf32, #tpu.memory_space<vmem>>, vector<36x8xf32>
    %c2 = arith.constant 2 : index
    %c0_12 = arith.constant 0 : index
    %10 = tpu.strided_load %arg13[%c2, %c0_12] {strides = array<i32: 2, 1>} : memref<146x8xf32, #tpu.memory_space<vmem>>, vector<36x8xf32>
    %11 = tpu.concatenate %8, %9, %10 in 1 : vector<36x8xf32>, vector<36x8xf32>, vector<36x8xf32> -> vector<36x24xf32>
    %c73 = arith.constant 73 : index
    %c0_13 = arith.constant 0 : index
    %12 = tpu.strided_load %arg13[%c73, %c0_13] {strides = array<i32: 2, 1>} : memref<146x8xf32, #tpu.memory_space<vmem>>, vector<36x8xf32>
    %c74 = arith.constant 74 : index
    %c0_14 = arith.constant 0 : index
    %13 = tpu.strided_load %arg13[%c74, %c0_14] {strides = array<i32: 2, 1>} : memref<146x8xf32, #tpu.memory_space<vmem>>, vector<36x8xf32>
    %c75 = arith.constant 75 : index
    %c0_15 = arith.constant 0 : index
    %14 = tpu.strided_load %arg13[%c75, %c0_15] {strides = array<i32: 2, 1>} : memref<146x8xf32, #tpu.memory_space<vmem>>, vector<36x8xf32>
    %15 = tpu.concatenate %12, %13, %14 in 1 : vector<36x8xf32>, vector<36x8xf32>, vector<36x8xf32> -> vector<36x24xf32>
    %16 = tpu.concatenate %11, %15 in 0 : vector<36x24xf32>, vector<36x24xf32> -> vector<72x24xf32>
    %c0_16 = arith.constant 0 : index
    %c0_17 = arith.constant 0 : index
    %17 = vector.load %arg2[%c0_16, %c0_17] : memref<24x32xf32, #tpu.memory_space<vmem>>, vector<24x32xf32>
    %cst_18 = arith.constant dense<0.000000e+00> : vector<72x32xf32>
    %18 = tpu.matmul %16, %17, %cst_18 {dimension_numbers = #tpu.dot_dimension_numbers<[1], [0], [0], [1], [0, 0, 1, 1], [], []>} : vector<72x24xf32>, vector<24x32xf32>, vector<72x32xf32> -> vector<72x32xf32>
    %c0_19 = arith.constant 0 : index
    %c0_20 = arith.constant 0 : index
    %19 = vector.load %arg3[%c0_19, %c0_20] : memref<1x32xf32, #tpu.memory_space<vmem>>, vector<1x32xf32>
    %20 = vector.broadcast %19 : vector<1x32xf32> to vector<72x32xf32>
    %21 = arith.addf %18, %20 : vector<72x32xf32>
    %cst_21 = arith.constant 0.000000e+00 : f32
    %22 = vector.broadcast %cst_21 : f32 to vector<72x32xf32>
    %23 = arith.cmpf oge, %21, %22 : vector<72x32xf32>
    %cst_22 = arith.constant 0.00999999977 : f32
    %24 = vector.broadcast %cst_22 : f32 to vector<72x32xf32>
    %25 = arith.mulf %24, %21 : vector<72x32xf32>
    %26 = arith.select %23, %21, %25 : vector<72x32xi1>, vector<72x32xf32>
    %cst_23 = arith.constant 0.000000e+00 : f32
    %27 = vector.broadcast %cst_23 : f32 to vector<74x32xf32>
    %c0_24 = arith.constant 0 : index
    %c0_25 = arith.constant 0 : index
    %28 = vector.load %arg14[%c0_24, %c0_25] : memref<74x32xf32, #tpu.memory_space<vmem>>, vector<74x32xf32>
    tpu.vector_store %arg14[%c0_24, %c0_25], %27 {strides = array<i32>} : memref<74x32xf32, #tpu.memory_space<vmem>>, vector<74x32xf32>,
    %29 = vector.extract_strided_slice %26 {offsets = [0, 0], sizes = [36, 32], strides = [1, 1]} : vector<72x32xf32> to vector<36x32xf32>
    %c1_26 = arith.constant 1 : index
    %c0_27 = arith.constant 0 : index
    %30 = vector.load %arg14[%c1_26, %c0_27] : memref<74x32xf32, #tpu.memory_space<vmem>>, vector<36x32xf32>
    tpu.vector_store %arg14[%c1_26, %c0_27], %29 {strides = array<i32>} : memref<74x32xf32, #tpu.memory_space<vmem>>, vector<36x32xf32>,
    %31 = vector.extract_strided_slice %26 {offsets = [36, 0], sizes = [36, 32], strides = [1, 1]} : vector<72x32xf32> to vector<36x32xf32>
    %c38 = arith.constant 38 : index
    %c0_28 = arith.constant 0 : index
    %32 = vector.load %arg14[%c38, %c0_28] : memref<74x32xf32, #tpu.memory_space<vmem>>, vector<36x32xf32>
    tpu.vector_store %arg14[%c38, %c0_28], %31 {strides = array<i32>} : memref<74x32xf32, #tpu.memory_space<vmem>>, vector<36x32xf32>,
    %c0_29 = arith.constant 0 : index
    %c0_30 = arith.constant 0 : index
    %33 = tpu.strided_load %arg14[%c0_29, %c0_30] {strides = array<i32: 2, 1>} : memref<74x32xf32, #tpu.memory_space<vmem>>, vector<18x32xf32>
    %c1_31 = arith.constant 1 : index
    %c0_32 = arith.constant 0 : index
    %34 = tpu.strided_load %arg14[%c1_31, %c0_32] {strides = array<i32: 2, 1>} : memref<74x32xf32, #tpu.memory_space<vmem>>, vector<18x32xf32>
    %c2_33 = arith.constant 2 : index
    %c0_34 = arith.constant 0 : index
    %35 = tpu.strided_load %arg14[%c2_33, %c0_34] {strides = array<i32: 2, 1>} : memref<74x32xf32, #tpu.memory_space<vmem>>, vector<18x32xf32>
    %36 = tpu.concatenate %33, %34, %35 in 1 : vector<18x32xf32>, vector<18x32xf32>, vector<18x32xf32> -> vector<18x96xf32>
    %c37 = arith.constant 37 : index
    %c0_35 = arith.constant 0 : index
    %37 = tpu.strided_load %arg14[%c37, %c0_35] {strides = array<i32: 2, 1>} : memref<74x32xf32, #tpu.memory_space<vmem>>, vector<18x32xf32>
    %c38_36 = arith.constant 38 : index
    %c0_37 = arith.constant 0 : index
    %38 = tpu.strided_load %arg14[%c38_36, %c0_37] {strides = array<i32: 2, 1>} : memref<74x32xf32, #tpu.memory_space<vmem>>, vector<18x32xf32>
    %c39 = arith.constant 39 : index
    %c0_38 = arith.constant 0 : index
    %39 = tpu.strided_load %arg14[%c39, %c0_38] {strides = array<i32: 2, 1>} : memref<74x32xf32, #tpu.memory_space<vmem>>, vector<18x32xf32>
    %40 = tpu.concatenate %37, %38, %39 in 1 : vector<18x32xf32>, vector<18x32xf32>, vector<18x32xf32> -> vector<18x96xf32>
    %41 = tpu.concatenate %36, %40 in 0 : vector<18x96xf32>, vector<18x96xf32> -> vector<36x96xf32>
    %c0_39 = arith.constant 0 : index
    %c0_40 = arith.constant 0 : index
    %42 = vector.load %arg4[%c0_39, %c0_40] : memref<96x32xf32, #tpu.memory_space<vmem>>, vector<96x32xf32>
    %cst_41 = arith.constant dense<0.000000e+00> : vector<36x32xf32>
    %43 = tpu.matmul %41, %42, %cst_41 {dimension_numbers = #tpu.dot_dimension_numbers<[1], [0], [0], [1], [0, 0, 1, 1], [], []>} : vector<36x96xf32>, vector<96x32xf32>, vector<36x32xf32> -> vector<36x32xf32>
    %c0_42 = arith.constant 0 : index
    %c0_43 = arith.constant 0 : index
    %44 = vector.load %arg5[%c0_42, %c0_43] : memref<1x32xf32, #tpu.memory_space<vmem>>, vector<1x32xf32>
    %45 = vector.broadcast %44 : vector<1x32xf32> to vector<36x32xf32>
    %46 = arith.addf %43, %45 : vector<36x32xf32>
    %cst_44 = arith.constant 0.000000e+00 : f32
    %47 = vector.broadcast %cst_44 : f32 to vector<36x32xf32>
    %48 = arith.cmpf oge, %46, %47 : vector<36x32xf32>
    %cst_45 = arith.constant 0.00999999977 : f32
    %49 = vector.broadcast %cst_45 : f32 to vector<36x32xf32>
    %50 = arith.mulf %49, %46 : vector<36x32xf32>
    %51 = arith.select %48, %46, %50 : vector<36x32xi1>, vector<36x32xf32>
    %cst_46 = arith.constant 0.000000e+00 : f32
    %52 = vector.broadcast %cst_46 : f32 to vector<38x32xf32>
    %c0_47 = arith.constant 0 : index
    %c0_48 = arith.constant 0 : index
    %53 = vector.load %arg15[%c0_47, %c0_48] : memref<38x32xf32, #tpu.memory_space<vmem>>, vector<38x32xf32>
    tpu.vector_store %arg15[%c0_47, %c0_48], %52 {strides = array<i32>} : memref<38x32xf32, #tpu.memory_space<vmem>>, vector<38x32xf32>,
    %54 = vector.extract_strided_slice %51 {offsets = [0, 0], sizes = [18, 32], strides = [1, 1]} : vector<36x32xf32> to vector<18x32xf32>
    %c1_49 = arith.constant 1 : index
    %c0_50 = arith.constant 0 : index
    %55 = vector.load %arg15[%c1_49, %c0_50] : memref<38x32xf32, #tpu.memory_space<vmem>>, vector<18x32xf32>
    tpu.vector_store %arg15[%c1_49, %c0_50], %54 {strides = array<i32>} : memref<38x32xf32, #tpu.memory_space<vmem>>, vector<18x32xf32>,
    %56 = vector.extract_strided_slice %51 {offsets = [18, 0], sizes = [18, 32], strides = [1, 1]} : vector<36x32xf32> to vector<18x32xf32>
    %c20 = arith.constant 20 : index
    %c0_51 = arith.constant 0 : index
    %57 = vector.load %arg15[%c20, %c0_51] : memref<38x32xf32, #tpu.memory_space<vmem>>, vector<18x32xf32>
    tpu.vector_store %arg15[%c20, %c0_51], %56 {strides = array<i32>} : memref<38x32xf32, #tpu.memory_space<vmem>>, vector<18x32xf32>,
    %c0_52 = arith.constant 0 : index
    %c0_53 = arith.constant 0 : index
    %58 = tpu.strided_load %arg15[%c0_52, %c0_53] {strides = array<i32: 2, 1>} : memref<38x32xf32, #tpu.memory_space<vmem>>, vector<9x32xf32>
    %c1_54 = arith.constant 1 : index
    %c0_55 = arith.constant 0 : index
    %59 = tpu.strided_load %arg15[%c1_54, %c0_55] {strides = array<i32: 2, 1>} : memref<38x32xf32, #tpu.memory_space<vmem>>, vector<9x32xf32>
    %c2_56 = arith.constant 2 : index
    %c0_57 = arith.constant 0 : index
    %60 = tpu.strided_load %arg15[%c2_56, %c0_57] {strides = array<i32: 2, 1>} : memref<38x32xf32, #tpu.memory_space<vmem>>, vector<9x32xf32>
    %61 = tpu.concatenate %58, %59, %60 in 1 : vector<9x32xf32>, vector<9x32xf32>, vector<9x32xf32> -> vector<9x96xf32>
    %c19 = arith.constant 19 : index
    %c0_58 = arith.constant 0 : index
    %62 = tpu.strided_load %arg15[%c19, %c0_58] {strides = array<i32: 2, 1>} : memref<38x32xf32, #tpu.memory_space<vmem>>, vector<9x32xf32>
    %c20_59 = arith.constant 20 : index
    %c0_60 = arith.constant 0 : index
    %63 = tpu.strided_load %arg15[%c20_59, %c0_60] {strides = array<i32: 2, 1>} : memref<38x32xf32, #tpu.memory_space<vmem>>, vector<9x32xf32>
    %c21 = arith.constant 21 : index
    %c0_61 = arith.constant 0 : index
    %64 = tpu.strided_load %arg15[%c21, %c0_61] {strides = array<i32: 2, 1>} : memref<38x32xf32, #tpu.memory_space<vmem>>, vector<9x32xf32>
    %65 = tpu.concatenate %62, %63, %64 in 1 : vector<9x32xf32>, vector<9x32xf32>, vector<9x32xf32> -> vector<9x96xf32>
    %66 = tpu.concatenate %61, %65 in 0 : vector<9x96xf32>, vector<9x96xf32> -> vector<18x96xf32>
    %c0_62 = arith.constant 0 : index
    %c0_63 = arith.constant 0 : index
    %67 = vector.load %arg6[%c0_62, %c0_63] : memref<96x32xf32, #tpu.memory_space<vmem>>, vector<96x32xf32>
    %cst_64 = arith.constant dense<0.000000e+00> : vector<18x32xf32>
    %68 = tpu.matmul %66, %67, %cst_64 {dimension_numbers = #tpu.dot_dimension_numbers<[1], [0], [0], [1], [0, 0, 1, 1], [], []>} : vector<18x96xf32>, vector<96x32xf32>, vector<18x32xf32> -> vector<18x32xf32>
    %c0_65 = arith.constant 0 : index
    %c0_66 = arith.constant 0 : index
    %69 = vector.load %arg7[%c0_65, %c0_66] : memref<1x32xf32, #tpu.memory_space<vmem>>, vector<1x32xf32>
    %70 = vector.broadcast %69 : vector<1x32xf32> to vector<18x32xf32>
    %71 = arith.addf %68, %70 : vector<18x32xf32>
    %cst_67 = arith.constant 0.000000e+00 : f32
    %72 = vector.broadcast %cst_67 : f32 to vector<18x32xf32>
    %73 = arith.cmpf oge, %71, %72 : vector<18x32xf32>
    %cst_68 = arith.constant 0.00999999977 : f32
    %74 = vector.broadcast %cst_68 : f32 to vector<18x32xf32>
    %75 = arith.mulf %74, %71 : vector<18x32xf32>
    %76 = arith.select %73, %71, %75 : vector<18x32xi1>, vector<18x32xf32>
    %cst_69 = arith.constant 0.000000e+00 : f32
    %77 = vector.broadcast %cst_69 : f32 to vector<22x32xf32>
    %c0_70 = arith.constant 0 : index
    %c0_71 = arith.constant 0 : index
    %78 = vector.load %arg16[%c0_70, %c0_71] : memref<22x32xf32, #tpu.memory_space<vmem>>, vector<22x32xf32>
    tpu.vector_store %arg16[%c0_70, %c0_71], %77 {strides = array<i32>} : memref<22x32xf32, #tpu.memory_space<vmem>>, vector<22x32xf32>,
    %79 = vector.extract_strided_slice %76 {offsets = [0, 0], sizes = [9, 32], strides = [1, 1]} : vector<18x32xf32> to vector<9x32xf32>
    %c1_72 = arith.constant 1 : index
    %c0_73 = arith.constant 0 : index
    %80 = vector.load %arg16[%c1_72, %c0_73] : memref<22x32xf32, #tpu.memory_space<vmem>>, vector<9x32xf32>
    tpu.vector_store %arg16[%c1_72, %c0_73], %79 {strides = array<i32>} : memref<22x32xf32, #tpu.memory_space<vmem>>, vector<9x32xf32>,
    %81 = vector.extract_strided_slice %76 {offsets = [9, 0], sizes = [9, 32], strides = [1, 1]} : vector<18x32xf32> to vector<9x32xf32>
    %c12 = arith.constant 12 : index
    %c0_74 = arith.constant 0 : index
    %82 = vector.load %arg16[%c12, %c0_74] : memref<22x32xf32, #tpu.memory_space<vmem>>, vector<9x32xf32>
    tpu.vector_store %arg16[%c12, %c0_74], %81 {strides = array<i32>} : memref<22x32xf32, #tpu.memory_space<vmem>>, vector<9x32xf32>,
    %c0_75 = arith.constant 0 : index
    %c0_76 = arith.constant 0 : index
    %83 = tpu.strided_load %arg16[%c0_75, %c0_76] {strides = array<i32: 2, 1>} : memref<22x32xf32, #tpu.memory_space<vmem>>, vector<5x32xf32>
    %c1_77 = arith.constant 1 : index
    %c0_78 = arith.constant 0 : index
    %84 = tpu.strided_load %arg16[%c1_77, %c0_78] {strides = array<i32: 2, 1>} : memref<22x32xf32, #tpu.memory_space<vmem>>, vector<5x32xf32>
    %c2_79 = arith.constant 2 : index
    %c0_80 = arith.constant 0 : index
    %85 = tpu.strided_load %arg16[%c2_79, %c0_80] {strides = array<i32: 2, 1>} : memref<22x32xf32, #tpu.memory_space<vmem>>, vector<5x32xf32>
    %86 = tpu.concatenate %83, %84, %85 in 1 : vector<5x32xf32>, vector<5x32xf32>, vector<5x32xf32> -> vector<5x96xf32>
    %c11 = arith.constant 11 : index
    %c0_81 = arith.constant 0 : index
    %87 = tpu.strided_load %arg16[%c11, %c0_81] {strides = array<i32: 2, 1>} : memref<22x32xf32, #tpu.memory_space<vmem>>, vector<5x32xf32>
    %c12_82 = arith.constant 12 : index
    %c0_83 = arith.constant 0 : index
    %88 = tpu.strided_load %arg16[%c12_82, %c0_83] {strides = array<i32: 2, 1>} : memref<22x32xf32, #tpu.memory_space<vmem>>, vector<5x32xf32>
    %c13 = arith.constant 13 : index
    %c0_84 = arith.constant 0 : index
    %89 = tpu.strided_load %arg16[%c13, %c0_84] {strides = array<i32: 2, 1>} : memref<22x32xf32, #tpu.memory_space<vmem>>, vector<5x32xf32>
    %90 = tpu.concatenate %87, %88, %89 in 1 : vector<5x32xf32>, vector<5x32xf32>, vector<5x32xf32> -> vector<5x96xf32>
    %91 = tpu.concatenate %86, %90 in 0 : vector<5x96xf32>, vector<5x96xf32> -> vector<10x96xf32>
    %c0_85 = arith.constant 0 : index
    %c0_86 = arith.constant 0 : index
    %92 = vector.load %arg8[%c0_85, %c0_86] : memref<96x64xf32, #tpu.memory_space<vmem>>, vector<96x64xf32>
    %cst_87 = arith.constant dense<0.000000e+00> : vector<10x64xf32>
    %93 = tpu.matmul %91, %92, %cst_87 {dimension_numbers = #tpu.dot_dimension_numbers<[1], [0], [0], [1], [0, 0, 1, 1], [], []>} : vector<10x96xf32>, vector<96x64xf32>, vector<10x64xf32> -> vector<10x64xf32>
    %c0_88 = arith.constant 0 : index
    %c0_89 = arith.constant 0 : index
    %94 = vector.load %arg9[%c0_88, %c0_89] : memref<1x64xf32, #tpu.memory_space<vmem>>, vector<1x64xf32>
    %95 = vector.broadcast %94 : vector<1x64xf32> to vector<10x64xf32>
    %96 = arith.addf %93, %95 : vector<10x64xf32>
    %c0_90 = arith.constant 0 : index
    %c0_91 = arith.constant 0 : index
    %97 = vector.load %arg17[%c0_90, %c0_91] : memref<10x64xf32, #tpu.memory_space<vmem>>, vector<10x64xf32>
    tpu.vector_store %arg17[%c0_90, %c0_91], %96 {strides = array<i32>} : memref<10x64xf32, #tpu.memory_space<vmem>>, vector<10x64xf32>,
    %c0_92 = arith.constant 0 : index
    %c0_93 = arith.constant 0 : index
    %98 = tpu.strided_load %arg17[%c0_92, %c0_93] {strides = array<i32: 5, 1>} : memref<10x64xf32, #tpu.memory_space<vmem>>, vector<2x64xf32>
    %c1_94 = arith.constant 1 : index
    %c0_95 = arith.constant 0 : index
    %99 = tpu.strided_load %arg17[%c1_94, %c0_95] {strides = array<i32: 5, 1>} : memref<10x64xf32, #tpu.memory_space<vmem>>, vector<2x64xf32>
    %c2_96 = arith.constant 2 : index
    %c0_97 = arith.constant 0 : index
    %100 = tpu.strided_load %arg17[%c2_96, %c0_97] {strides = array<i32: 5, 1>} : memref<10x64xf32, #tpu.memory_space<vmem>>, vector<2x64xf32>
    %c3 = arith.constant 3 : index
    %c0_98 = arith.constant 0 : index
    %101 = tpu.strided_load %arg17[%c3, %c0_98] {strides = array<i32: 5, 1>} : memref<10x64xf32, #tpu.memory_space<vmem>>, vector<2x64xf32>
    %c4 = arith.constant 4 : index
    %c0_99 = arith.constant 0 : index
    %102 = tpu.strided_load %arg17[%c4, %c0_99] {strides = array<i32: 5, 1>} : memref<10x64xf32, #tpu.memory_space<vmem>>, vector<2x64xf32>
    %103 = tpu.concatenate %98, %99, %100, %101, %102 in 1 : vector<2x64xf32>, vector<2x64xf32>, vector<2x64xf32>, vector<2x64xf32>, vector<2x64xf32> -> vector<2x320xf32>
    %c0_100 = arith.constant 0 : index
    %c0_101 = arith.constant 0 : index
    %104 = vector.load %arg10[%c0_100, %c0_101] : memref<320x5xf32, #tpu.memory_space<vmem>>, vector<320x5xf32>
    %cst_102 = arith.constant dense<0.000000e+00> : vector<2x5xf32>
    %105 = tpu.matmul %103, %104, %cst_102 {dimension_numbers = #tpu.dot_dimension_numbers<[1], [0], [0], [1], [0, 0, 1, 1], [], []>} : vector<2x320xf32>, vector<320x5xf32>, vector<2x5xf32> -> vector<2x5xf32>
    %c0_103 = arith.constant 0 : index
    %c0_104 = arith.constant 0 : index
    %106 = vector.load %arg11[%c0_103, %c0_104] : memref<1x1xf32, #tpu.memory_space<vmem>>, vector<1x1xf32>
    %107 = vector.broadcast %106 : vector<1x1xf32> to vector<2x5xf32>
    %108 = arith.addf %105, %107 : vector<2x5xf32>
    %c0_105 = arith.constant 0 : index
    %c0_106 = arith.constant 0 : index
    %c0_107 = arith.constant 0 : index
    %109 = vector.load %arg12[%c0_105, %c0_106, %c0_107] : memref<1x2x5xf32, #tpu.memory_space<vmem>>, vector<1x2x5xf32>
    %110 = vector.shape_cast %109 : vector<1x2x5xf32> to vector<2x5xf32>
    %111 = vector.shape_cast %108 : vector<2x5xf32> to vector<1x2x5xf32>
    tpu.vector_store %arg12[%c0_105, %c0_106, %c0_107], %111 {strides = array<i32>} : memref<1x2x5xf32, #tpu.memory_space<vmem>>, vector<1x2x5xf32>,
    return
  }
  func.func @transform_0(%arg0: i32) -> (i32, i32, i32) {
    %c0_i32 = arith.constant 0 : i32
    %c0_i32_0 = arith.constant 0 : i32
    %c0_i32_1 = arith.constant 0 : i32
    return %arg0, %c0_i32, %c0_i32_0 : i32, i32, i32
  }
  func.func @transform_1(%arg0: i32) -> (i32, i32) {
    %c0_i32 = arith.constant 0 : i32
    %c0_i32_0 = arith.constant 0 : i32
    %c0_i32_1 = arith.constant 0 : i32
    return %c0_i32, %c0_i32_0 : i32, i32
  }
  func.func @transform_2(%arg0: i32) -> (i32, i32) {
    %c0_i32 = arith.constant 0 : i32
    %c0_i32_0 = arith.constant 0 : i32
    %c0_i32_1 = arith.constant 0 : i32
    return %c0_i32, %c0_i32_0 : i32, i32
  }
  func.func @transform_3(%arg0: i32) -> (i32, i32) {
    %c0_i32 = arith.constant 0 : i32
    %c0_i32_0 = arith.constant 0 : i32
    %c0_i32_1 = arith.constant 0 : i32
    return %c0_i32, %c0_i32_0 : i32, i32
  }
  func.func @transform_4(%arg0: i32) -> (i32, i32) {
    %c0_i32 = arith.constant 0 : i32
    %c0_i32_0 = arith.constant 0 : i32
    %c0_i32_1 = arith.constant 0 : i32
    return %c0_i32, %c0_i32_0 : i32, i32
  }
  func.func @transform_5(%arg0: i32) -> (i32, i32) {
    %c0_i32 = arith.constant 0 : i32
    %c0_i32_0 = arith.constant 0 : i32
    %c0_i32_1 = arith.constant 0 : i32
    return %c0_i32, %c0_i32_0 : i32, i32
  }
  func.func @transform_6(%arg0: i32) -> (i32, i32) {
    %c0_i32 = arith.constant 0 : i32
    %c0_i32_0 = arith.constant 0 : i32
    %c0_i32_1 = arith.constant 0 : i32
    return %c0_i32, %c0_i32_0 : i32, i32
  }
  func.func @transform_7(%arg0: i32) -> (i32, i32) {
    %c0_i32 = arith.constant 0 : i32
    %c0_i32_0 = arith.constant 0 : i32
    %c0_i32_1 = arith.constant 0 : i32
    return %c0_i32, %c0_i32_0 : i32, i32
  }
  func.func @transform_8(%arg0: i32) -> (i32, i32) {
    %c0_i32 = arith.constant 0 : i32
    %c0_i32_0 = arith.constant 0 : i32
    %c0_i32_1 = arith.constant 0 : i32
    return %c0_i32, %c0_i32_0 : i32, i32
  }
  func.func @transform_9(%arg0: i32) -> (i32, i32) {
    %c0_i32 = arith.constant 0 : i32
    %c0_i32_0 = arith.constant 0 : i32
    %c0_i32_1 = arith.constant 0 : i32
    return %c0_i32, %c0_i32_0 : i32, i32
  }
  func.func @transform_10(%arg0: i32) -> (i32, i32) {
    %c0_i32 = arith.constant 0 : i32
    %c0_i32_0 = arith.constant 0 : i32
    %c0_i32_1 = arith.constant 0 : i32
    return %c0_i32, %c0_i32_0 : i32, i32
  }
  func.func @transform_11(%arg0: i32) -> (i32, i32, i32) {
    %c0_i32 = arith.constant 0 : i32
    %c0_i32_0 = arith.constant 0 : i32
    %c0_i32_1 = arith.constant 0 : i32
    return %arg0, %c0_i32, %c0_i32_0 : i32, i32, i32
  }
}

</mosaic_0001>

<bundles_post_ra>
// kernel: tile.15
= control target key start
LH: loop header
LB: loop body
LE: loop exit
PB: predicated region body
PF: predicated region fallthrough
CT: control target
= control target key end

     0   :  { %s22_s0 = inlined_call_operand.vmem [shape: f32[8], index: 0, kind: input, shape index: {}]   ;;  %s23_s1 = inlined_call_operand.vmem [shape: f32[4,8], index: 1, kind: output, shape index: {}]  }
   0x1   :  { %v4_v0 = vld [vmem:[%s22_s0] ss:$0 sm:$0xff] }
   0x2   :  { %5 = vst [vmem:[%s23_s1] sm:$0xf] %v4_v0 }

// kernel: tile.16
= control target key start
LH: loop header
LB: loop body
LE: loop exit
PB: predicated region body
PF: predicated region fallthrough
CT: control target
= control target key end

     0   :  { %vm7_vm0 = vcmask 64512   ;;  %s37_s8 = smov 8   ;;  %s38_s9 = smov 16   ;;  %vm13_vm1 = vcmask 261312   ;;  %vm19_vm2 = vcmask 195712   ;;  %vm25_vm3 = vcmask 130112   ;;  %s55_s0 = inlined_call_operand.vmem [shape: f32[4,8], index: 0, kind: input, shape index: {}]   ;;  %s56_s1 = inlined_call_operand.vmem [shape: f32[1,32], index: 1, kind: output, shape index: {}]  }
   0x1   :  { %v4_v0 = vld [vmem:[%s55_s0] sm:$0xf]  ;;  %s36_s0 = smov 24  }
   0x2   :  { %5 = vst [vmem:[#allocation1] sm:$0xf] %v4_v0 }
   0x9   :  { %v10_v1 = vld [vmem:[#allocation1 + $0x3] sm:$0x1]   ;;  %v22_v2 = vld [vmem:[#allocation1 + $0x1] sm:$0x1]   ;;  %v6_v3 = vld [vmem:[#allocation1] sm:$0x1]  }
   0xa   :  { %11 = vrot.lane.b32.xlu0 %v10_v1, %s36_s0  ;;  %23 = vrot.lane.b32.xlu1 %v22_v2, %s37_s8  ;;  %v16_v4 = vld [vmem:[#allocation1 + $0x2] sm:$0x1]   ;;  %8 = vst.msk [vmem:[#allocation0] sm:$0x1] %vm7_vm0, %v6_v3  }
   0xe   :  { %17 = vrot.lane.b32.xlu0 %v16_v4, %s38_s9 }
  0x7c   :  { %v12_v5 = vpop.permute.xlu0 %11   ;;  %v24_v6 = vpop.permute.xlu1 %23  }
  0x7d   :  { %14 = vst.msk [vmem:[#allocation0] sm:$0x1] %vm13_vm1, %v12_v5  }
  0x80   :  { %v18_v7 = vpop.permute.xlu0 %17  }
  0x81   :  { %20 = vst.msk [vmem:[#allocation0] sm:$0x1] %vm19_vm2, %v18_v7  }
  0x82   :  { %26 = vst.msk [vmem:[#allocation0] sm:$0x1] %vm25_vm3, %v24_v6  }
  0x89   :  { %v30_v8 = vld [vmem:[#allocation0] sm:$0x1] }
  0x8a   :  { %32 = vst [vmem:[%s56_s1] sm:$0x1] %v30_v8 }

// kernel: tile.20
= control target key start
LH: loop header
LB: loop body
LE: loop exit
PB: predicated region body
PF: predicated region fallthrough
CT: control target
= control target key end

     0   :  { %s22_s0 = inlined_call_operand.vmem [shape: f32[16], index: 0, kind: input, shape index: {}]   ;;  %s23_s1 = inlined_call_operand.vmem [shape: f32[2,16], index: 1, kind: output, shape index: {}]  }
   0x1   :  { %v4_v0 = vld [vmem:[%s22_s0] ss:$0 sm:$0xff] }
   0x2   :  { %5 = vst [vmem:[%s23_s1] sm:$0x3] %v4_v0 }

// kernel: tile.21
= control target key start
LH: loop header
LB: loop body
LE: loop exit
PB: predicated region body
PF: predicated region fallthrough
CT: control target
= control target key end

     0   :  { %vm7_vm0 = vcmask 130048   ;;  %vm13_vm1 = vcmask 261248   ;;  %s39_s0 = inlined_call_operand.vmem [shape: f32[2,16], index: 0, kind: input, shape index: {}]   ;;  %s40_s1 = inlined_call_operand.vmem [shape: f32[1,32], index: 1, kind: output, shape index: {}]  }
   0x1   :  { %v4_v0 = vld [vmem:[%s39_s0] sm:$0x3]  ;;  %s22_s0 = smov 16  }
   0x2   :  { %5 = vst [vmem:[#allocation1] sm:$0x3] %v4_v0 }
   0x9   :  { %v10_v1 = vld [vmem:[#allocation1 + $0x1] sm:$0x1]   ;;  %v6_v2 = vld [vmem:[#allocation1] sm:$0x1]  }
   0xa   :  { %11 = vrot.lane.b32.xlu0 %v10_v1, %s22_s0  ;;  %8 = vst.msk [vmem:[#allocation0] sm:$0x1] %vm7_vm0, %v6_v2  }
  0x7c   :  { %v12_v3 = vpop.permute.xlu0 %11  }
  0x7d   :  { %14 = vst.msk [vmem:[#allocation0] sm:$0x1] %vm13_vm1, %v12_v3  }
  0x84   :  { %v18_v4 = vld [vmem:[#allocation0] sm:$0x1] }
  0x85   :  { %20 = vst [vmem:[%s40_s1] sm:$0x1] %v18_v4 }

// kernel: discriminator_forward.1
= control target key start
LH: loop header
LB: loop body
LE: loop exit
PB: predicated region body
PF: predicated region fallthrough
CT: control target
= control target key end

     0   :  { %vm40_vm0 = vcmask 64512   ;;  %vm59_vm1 = vcmask 58368   ;;  %v1653_v0 = vmov 0.0   ;;  %v1654_v3 = vmov 0.0|0.0   ;;  %s1656_s26 = smov 8   ;;  %s1657_s27 = smov 16   ;;  %s2259_s0 = inlined_call_operand.vmem [shape: f32[2,8,8], index: 0, kind: input, shape index: {}]   ;;  %s2260_s1 = inlined_call_operand.vmem [shape: f32[24,32], index: 1, kind: input, shape index: {}]   ;;  %s2261_s3 = inlined_call_operand.vmem [shape: f32[96,32], index: 3, kind: input, shape index: {}]   ;;  %s2262_s2 = inlined_call_operand.vmem [shape: f32[1,32], index: 2, kind: input, shape index: {}]   ;;  %s2263_s5 = inlined_call_operand.vmem [shape: f32[96,32], index: 5, kind: input, shape index: {}]   ;;  %s2264_s4 = inlined_call_operand.vmem [shape: f32[1,32], index: 4, kind: input, shape index: {}]   ;;  %s2265_s7 = inlined_call_operand.vmem [shape: f32[96,64], index: 7, kind: input, shape index: {}]   ;;  %s2266_s6 = inlined_call_operand.vmem [shape: f32[1,32], index: 6, kind: input, shape index: {}]   ;;  %s2267_s9 = inlined_call_operand.vmem [shape: f32[320,5], index: 9, kind: input, shape index: {}]   ;;  %s2268_s8 = inlined_call_operand.vmem [shape: f32[1,64], index: 8, kind: input, shape index: {}]   ;;  %s2269_s10 = inlined_call_operand.<no memory space> [shape: f32[1,1], index: 10, kind: input, shape index: {}]   ;;  %s2270_s11 = inlined_call_operand.vmem [shape: f32[1,2,5], index: 11, kind: output, shape index: {}]  }
   0x1   :  { %43 = vst.msk [vmem:[#allocation2 + $0x10] sm:$0xff] %vm40_vm0, %v1653_v0  ;;  %44 = vst.msk [vmem:[#allocation2 + $0x18] sm:$0xff] %vm40_vm0, %v1653_v0  ;;  %v61_v1 = vld [vmem:[%s2259_s0] sm:$0xff]  ;;  %v1248_v2 = vld [vmem:[%s2259_s0 + $0x8] sm:$0xff]  ;;  %1527 = vmatprep.subr.bf16.mxu0 %v1654_v3  ;;  %1634 = vmatprep.subr.bf16.mxu1 %v1654_v3  ;;  %vm1655_vm2 = vmmov 0   ;;  %vm140_vm3 = vcmask 130048  }
   0x2   :  { %41 = vst.msk [vmem:[#allocation2] sm:$0xff] %vm40_vm0, %v1653_v0  ;;  %42 = vst.msk [vmem:[#allocation2 + $0x8] sm:$0xff] %vm40_vm0, %v1653_v0  ;;  %v243_v4 = vld [vmem:[%s2260_s1] sm:$0xff]  ;;  %v244_v5 = vld [vmem:[%s2260_s1 + $0x8] sm:$0xff]  ;;  %1382 = vmatprep.mubr.msk.f32.mxu0 %vm1655_vm2, %v1653_v0  ;;  %1400 = vmatprep.mubr.msk.f32.mxu1 %vm1655_vm2, %v1653_v0  ;;  %vm253_vm4 = vcmask 195584   ;;  %vm231_vm5 = vcmask 1043456  }
   0x3   :  { %45 = vst.msk [vmem:[#allocation2 + $0x20] sm:$0xff] %vm40_vm0, %v1653_v0  ;;  %46 = vst.msk [vmem:[#allocation2 + $0x28] sm:$0xff] %vm40_vm0, %v1653_v0  ;;  %v1528_v6 = vpack.c.bf16 %v244_v5, %v243_v4  ;;  %v245_v7 = vld [vmem:[%s2260_s1 + $0x10] sm:$0xff]  ;;  %vm414_vm6 = vcmask 261120   ;;  %vm424_vm7 = vcmask 254976   ;;  %vm430_vm14 = vcmask 257024  }
   0x4   :  { %47 = vst.msk [vmem:[#allocation2 + $0x30] sm:$0xff] %vm40_vm0, %v1653_v0  ;;  %48 = vst.msk [vmem:[#allocation2 + $0x38] sm:$0xff] %vm40_vm0, %v1653_v0  ;;  %vm432_vm15 = vcmask 261124  }
   0x5   :  { %49 = vst.msk [vmem:[#allocation2 + $0x40] sm:$0xff] %vm40_vm0, %v1653_v0  ;;  %50 = vst.msk [vmem:[#allocation2 + $0x48] sm:$0xff] %vm40_vm0, %v1653_v0  ;;  %1529 = vmatpush3.bf16.msra.mxu0 %v1528_v6  ;;  %1636 = vmatpush3.bf16.msra.mxu1 %v1528_v6 }
   0x6   :  { %51 = vst.msk [vmem:[#allocation2 + $0x50] sm:$0xff] %vm40_vm0, %v1653_v0  ;;  %52 = vst.msk [vmem:[#allocation2 + $0x58] sm:$0xff] %vm40_vm0, %v1653_v0  ;;  %1380 = vmatprep.subr.mxu0 %v1653_v0  ;;  %1635 = vmatprep.subr.mxu1 %v1653_v0 }
   0x7   :  { %53 = vst.msk [vmem:[#allocation2 + $0x60] sm:$0xff] %vm40_vm0, %v1653_v0  ;;  %54 = vst.msk [vmem:[#allocation2 + $0x68] sm:$0xff] %vm40_vm0, %v1653_v0 }
   0x8   :  { %55 = vst.msk [vmem:[#allocation2 + $0x70] sm:$0xff] %vm40_vm0, %v1653_v0  ;;  %56 = vst.msk [vmem:[#allocation2 + $0x78] sm:$0xff] %vm40_vm0, %v1653_v0  ;;  %v78_v8 = vld [vmem:[#allocation2 + $0x11] ss:$2 sm:$0xff]  ;;  %v68_v34 = vld [vmem:[#allocation2 + $0x10] ss:$2 sm:$0xff] }
   0x9   :  { %57 = vst.msk [vmem:[#allocation2 + $0x80] sm:$0xff] %vm40_vm0, %v1653_v0  ;;  %58 = vst.msk [vmem:[#allocation2 + $0x88] sm:$0xff] %vm40_vm0, %v1653_v0  ;;  %v76_v9 = vld [vmem:[#allocation2 + $0x1] ss:$2 sm:$0xff]  ;;  %102 = vrot.lane.b32.xlu1 %v78_v8, %s1656_s26  ;;  %v86_v11 = vld [vmem:[#allocation2 + $0x2] ss:$2 sm:$0xff]  ;;  %1381 = vmatpush3.msra.mxu0 %v245_v7 }
   0xa   :  { %60 = vst.msk [vmem:[#allocation2 + $0x90] sm:$0x3] %vm59_vm1, %v1653_v0  ;;  %100 = vrot.lane.b32.xlu0 %v76_v9, %s1656_s26  ;;  %v88_v10 = vld [vmem:[#allocation2 + $0x12] ss:$2 sm:$0xff]  ;;  %1637 = vmatpush3.msra.mxu1 %v245_v7 }
   0xb   :  { %62 = vst.msk [vmem:[#allocation2 + $0x21] sm:$0xff] %vm40_vm0, %v61_v1  ;;  %65 = vst.msk [vmem:[#allocation2 + $0x6a] sm:$0xff] %vm40_vm0, %v1248_v2  ;;  %1530 = vmatprep.subr.bf16.mxu1 %v1654_v3  ;;  %1548 = vmatprep.subr.bf16.mxu0 %v1654_v3  ;;  %v82_v15 = vld [vmem:[#allocation2 + $0x31] ss:$2 sm:$0xff]  ;;  %v66_v30 = vld [vmem:[#allocation2] ss:$2 sm:$0xff] }
   0xc   :  { %v92_v14 = vld [vmem:[#allocation2 + $0x32] ss:$2 sm:$0xff]  ;;  %v84_v22 = vld [vmem:[#allocation2 + $0x41] ss:$2 sm:$0xf]  ;;  %415 = vst.msk [vmem:[#allocation3] sm:$0xff] %vm414_vm6, %v1653_v0 }
   0xd   :  { %122 = vrot.lane.b32.xlu1 %v88_v10, %s1657_s27  ;;  %v157_v17 = vld [vmem:[#allocation2 + $0x4a] ss:$2 sm:$0xff]  ;;  %v167_v18 = vld [vmem:[#allocation2 + $0x4b] ss:$2 sm:$0xff]  ;;  %416 = vst.msk [vmem:[#allocation3 + $0x8] sm:$0xff] %vm414_vm6, %v1653_v0  ;;  %417 = vst.msk [vmem:[#allocation3 + $0x10] sm:$0xff] %vm414_vm6, %v1653_v0 }
   0xe   :  { %120 = vrot.lane.b32.xlu0 %v86_v11, %s1657_s27  ;;  %v159_v16 = vld [vmem:[#allocation2 + $0x5a] ss:$2 sm:$0xff]  ;;  %v169_v21 = vld [vmem:[#allocation2 + $0x5b] ss:$2 sm:$0xff]  ;;  %418 = vst.msk [vmem:[#allocation3 + $0x18] sm:$0xff] %vm414_vm6, %v1653_v0  ;;  %419 = vst.msk [vmem:[#allocation3 + $0x20] sm:$0xff] %vm414_vm6, %v1653_v0 }
   0xf   :  { %v94_v23 = vld [vmem:[#allocation2 + $0x42] ss:$2 sm:$0xf]  ;;  %v72_v42 = vld [vmem:[#allocation2 + $0x30] ss:$2 sm:$0xff]  ;;  %420 = vst.msk [vmem:[#allocation3 + $0x28] sm:$0xff] %vm414_vm6, %v1653_v0 }
  0x10   :  { %v163_v24 = vld [vmem:[#allocation2 + $0x7a] ss:$2 sm:$0xff]  ;;  %v173_v25 = vld [vmem:[#allocation2 + $0x7b] ss:$2 sm:$0xff]  ;;  %421 = vst.msk [vmem:[#allocation3 + $0x30] sm:$0xff] %vm414_vm6, %v1653_v0  ;;  %422 = vst.msk [vmem:[#allocation3 + $0x38] sm:$0xff] %vm414_vm6, %v1653_v0 }
  0x11   :  { %v165_v26 = vld [vmem:[#allocation2 + $0x8a] ss:$2 sm:$0xf]  ;;  %v175_v27 = vld [vmem:[#allocation2 + $0x8b] ss:$2 sm:$0xf] }
  0x12   :  { %v90_v12 = vld [vmem:[#allocation2 + $0x22] ss:$2 sm:$0xff]  ;;  %v80_v13 = vld [vmem:[#allocation2 + $0x21] ss:$2 sm:$0xff]  ;;  %423 = vst.msk [vmem:[#allocation3 + $0x40] sm:$0xff] %vm414_vm6, %v1653_v0  ;;  %683 = vst.msk [vmem:[#allocation4] sm:$0xff] %vm414_vm6, %v1653_v0 }
  0x13   :  { %124 = vrot.lane.b32.xlu1 %v90_v12, %s1657_s27  ;;  %104 = vrot.lane.b32.xlu0 %v80_v13, %s1656_s26  ;;  %v161_v19 = vld [vmem:[#allocation2 + $0x6a] ss:$2 sm:$0xff]  ;;  %v171_v20 = vld [vmem:[#allocation2 + $0x6b] ss:$2 sm:$0xff]  ;;  %684 = vst.msk [vmem:[#allocation4 + $0x8] sm:$0xff] %vm414_vm6, %v1653_v0  ;;  %685 = vst.msk [vmem:[#allocation4 + $0x10] sm:$0xff] %vm414_vm6, %v1653_v0 }
  0x14   :  { %v70_v36 = vld [vmem:[#allocation2 + $0x20] ss:$2 sm:$0xff]  ;;  %v149_v52 = vld [vmem:[#allocation2 + $0x59] ss:$2 sm:$0xff]  ;;  %v151_v53 = vld [vmem:[#allocation2 + $0x69] ss:$2 sm:$0xff] }
  0x15   :  { %v147_v54 = vld [vmem:[#allocation2 + $0x49] ss:$2 sm:$0xff]  ;;  %v74_v2 = vld [vmem:[#allocation2 + $0x40] ss:$2 sm:$0xf]  ;;  %686 = vst.msk [vmem:[#allocation4 + $0x18] sm:$0xff] %vm414_vm6, %v1653_v0 }
  0x16   :  { %v153_v10 = vld [vmem:[#allocation2 + $0x79] ss:$2 sm:$0xff]  ;;  %883 = vst.msk [vmem:[#allocation5] sm:$0xff] %vm414_vm6, %v1653_v0  ;;  %884 = vst.msk [vmem:[#allocation5 + $0x8] sm:$0xff] %vm414_vm6, %v1653_v0 }
  0x17   :  { %126 = vrot.lane.b32.xlu1 %v92_v14, %s1657_s27  ;;  %106 = vrot.lane.b32.xlu0 %v82_v15, %s1656_s26  ;;  %425 = vst.msk [vmem:[#allocation3 + $0x48] sm:$0x3] %vm424_vm7, %v1653_v0 }
  0x1b   :  { %183 = vrot.lane.b32.xlu1 %v159_v16, %s1656_s26  ;;  %181 = vrot.lane.b32.xlu0 %v157_v17, %s1656_s26  ;;  %v155_v16 = vld [vmem:[#allocation2 + $0x89] ss:$2 sm:$0xf] }
  0x1f   :  { %201 = vrot.lane.b32.xlu1 %v167_v18, %s1657_s27  ;;  %185 = vrot.lane.b32.xlu0 %v161_v19, %s1656_s26 }
  0x23   :  { %205 = vrot.lane.b32.xlu1 %v171_v20, %s1657_s27  ;;  %203 = vrot.lane.b32.xlu0 %v169_v21, %s1657_s27 }
  0x27   :  { %108 = vrot.lane.b32.xlu0 %v84_v22, %s1656_s26  ;;  %128 = vrot.lane.b32.xlu1 %v94_v23, %s1657_s27 }
  0x2b   :  { %187 = vrot.lane.b32.xlu0 %v163_v24, %s1656_s26  ;;  %207 = vrot.lane.b32.xlu1 %v173_v25, %s1657_s27 }
  0x2f   :  { %189 = vrot.lane.b32.xlu0 %v165_v26, %s1656_s26  ;;  %209 = vrot.lane.b32.xlu1 %v175_v27, %s1657_s27  ;;  %v545_v26 = vld [vmem:[%s2261_s3] sm:$0xff]  ;;  %v546_v27 = vld [vmem:[%s2261_s3 + $0x8] sm:$0xff] }
  0x7b   :  { %v103_v28 = vpop.permute.xlu1 %102 }
  0x7c   :  { %v101_v29 = vpop.permute.xlu0 %100  ;;  %v136_v37 = vsel %vm40_vm0, %v68_v34, %v103_v28  ;;  %v547_v28 = vld [vmem:[%s2261_s3 + $0x10] sm:$0xff] }
  0x7d   :  { %v135_v31 = vsel %vm40_vm0, %v66_v30, %v101_v29  ;;  %v1531_v29 = vpack.c.bf16 %v546_v27, %v545_v26  ;;  %v548_v30 = vld [vmem:[%s2261_s3 + $0x18] sm:$0xff] }
  0x7f   :  { %v123_v32 = vpop.permute.xlu1 %122 }
  0x80   :  { %v121_v33 = vpop.permute.xlu0 %120  ;;  %v142_v40 = vsel %vm140_vm3, %v136_v37, %v123_v32  ;;  %v549_v32 = vld [vmem:[%s2261_s3 + $0x20] sm:$0xff] }
  0x81   :  { %v141_v35 = vsel %vm140_vm3, %v135_v31, %v121_v33  ;;  %v1534_v31 = vpack.c.bf16 %v548_v30, %v547_v28  ;;  %v550_v33 = vld [vmem:[%s2261_s3 + $0x28] sm:$0xff] }
  0x82   :  { %1383 = vmatmul.mubr.msk.f32.vlgmr.msra.gmra.mrb[0].mxu0 %vm253_vm4, %v141_v35  ;;  %v1537_v34 = vpack.c.bf16 %v550_v33, %v549_v32  ;;  %v551_v35 = vld [vmem:[%s2261_s3 + $0x30] sm:$0xff] }
  0x83   :  { %1385 = vmatprep.mubr.msk.f32.mxu0 %vm1655_vm2, %v1653_v0 }
  0x85   :  { %v125_v38 = vpop.permute.xlu1 %124  ;;  %v105_v39 = vpop.permute.xlu0 %104 }
  0x86   :  { %v137_v41 = vsel %vm40_vm0, %v70_v36, %v105_v39  ;;  %1386 = vmatmul.mubr.msk.f32.gmra.mrb[2].mxu0 %vm253_vm4, %v142_v40  ;;  %v552_v36 = vld [vmem:[%s2261_s3 + $0x38] sm:$0xff]  ;;  %v554_v39 = vld [vmem:[%s2261_s3 + $0x48] sm:$0xff] }
  0x87   :  { %1388 = vmatprep.mubr.msk.f32.mxu0 %vm1655_vm2, %v1653_v0  ;;  %v143_v45 = vsel %vm140_vm3, %v137_v41, %v125_v38  ;;  %v1540_v37 = vpack.c.bf16 %v552_v36, %v551_v35  ;;  %v553_v38 = vld [vmem:[%s2261_s3 + $0x40] sm:$0xff] }
  0x88   :  { %v1543_v40 = vpack.c.bf16 %v554_v39, %v553_v38  ;;  %v1928_v41 = vld [vmem:[%s2262_s2] ss:$0 sm:$0xff]  ;;  %s1658_s2 = smov 64  }
  0x89   :  { %v127_v43 = vpop.permute.xlu1 %126  ;;  %v107_v44 = vpop.permute.xlu0 %106 }
  0x8a   :  { %v138_v46 = vsel %vm40_vm0, %v72_v42, %v107_v44  ;;  %1389 = vmatmul.mubr.msk.f32.gmra.mrb[4].mxu0 %vm253_vm4, %v143_v45  ;;  %v555_v45 = vld [vmem:[%s2261_s3 + $0x50] sm:$0xff] }
  0x8b   :  { %1391 = vmatprep.mubr.msk.f32.mxu0 %vm1655_vm2, %v1653_v0  ;;  %v144_v49 = vsel %vm140_vm3, %v138_v46, %v127_v43  ;;  %v556_v46 = vld [vmem:[%s2261_s3 + $0x58] sm:$0xff]  ;;  %s1659_s3 = smov 32  }
  0x8d   :  { %v184_v47 = vpop.permute.xlu1 %183  ;;  %v182_v48 = vpop.permute.xlu0 %181 }
  0x8e   :  { %1392 = vmatmul.mubr.msk.f32.gmra.mrb[6].mxu0 %vm253_vm4, %v144_v49  ;;  %v217_v55 = vsel %vm40_vm0, %v149_v52, %v184_v47  ;;  %v216_v59 = vsel %vm40_vm0, %v147_v54, %v182_v48  ;;  %v1546_v48 = vpack.c.bf16 %v556_v46, %v555_v45 }
  0x8f   :  { %1394 = vmatprep.mubr.msk.f32.mxu0 %vm1655_vm2, %v1653_v0 }
  0x91   :  { %v202_v50 = vpop.permute.xlu1 %201  ;;  %v186_v51 = vpop.permute.xlu0 %185 }
  0x92   :  { %v218_v56 = vsel %vm40_vm0, %v151_v53, %v186_v51  ;;  %v221_v62 = vsel %vm140_vm3, %v216_v59, %v202_v50 }
  0x93   :  { %v232_v7 = vrot.slane %v221_v62, 4 }
  0x95   :  { %v206_v57 = vpop.permute.xlu1 %205  ;;  %v204_v58 = vpop.permute.xlu0 %203 }
  0x96   :  { %v223_v60 = vsel %vm140_vm3, %v218_v56, %v206_v57  ;;  %v222_v61 = vsel %vm140_vm3, %v217_v55, %v204_v58 }
  0x97   :  { %v235_v63 = vrot.slane %v223_v60, 4  ;;  %v233_v1 = vrot.slane %v222_v61, 4 }
  0x99   :  { %v109_v4 = vpop.permute.xlu0 %108  ;;  %v129_v5 = vpop.permute.xlu1 %128  ;;  %v236_v6 = vsel %vm231_vm5, %v233_v1, %v235_v63  ;;  %v234_v18 = vsel %vm231_vm5, %v232_v7, %v233_v1 }
  0x9a   :  { %v139_v8 = vsel %vm40_vm0, %v74_v2, %v109_v4  ;;  %1401 = vmatmul.mubr.msk.f32.vlgmr.msra.gmra.mrb[0].mxu1 %vm253_vm4, %v236_v6 }
  0x9b   :  { %v145_v9 = vsel %vm140_vm3, %v139_v8, %v129_v5  ;;  %1403 = vmatprep.mubr.msk.f32.mxu1 %vm1655_vm2, %v1653_v0  ;;  %1532 = vmatpush3.bf16.msra.mxu1 %v1531_v29 }
  0x9c   :  { %v242_v11 = vsel %vm231_vm5, %v145_v9, %v232_v7  ;;  %1533 = vmatprep.subr.bf16.mxu1 %v1654_v3 }
  0x9d   :  { %v188_v12 = vpop.permute.xlu0 %187  ;;  %1395 = vmatmul.mubr.msk.f32.gmra.mrb[8].mxu0 %vm253_vm4, %v242_v11  ;;  %v208_v13 = vpop.permute.xlu1 %207 }
  0x9e   :  { %v219_v14 = vsel %vm40_vm0, %v153_v10, %v188_v12  ;;  %1397 = vmatprep.mubr.msk.f32.mxu0 %vm1655_vm2, %v1653_v0 }
  0x9f   :  { %v224_v15 = vsel %vm140_vm3, %v219_v14, %v208_v13  ;;  %1535 = vmatpush3.bf16.msra.mxu1 %v1534_v31 }
  0xa0   :  { %v237_v17 = vrot.slane %v224_v15, 4  ;;  %1536 = vmatprep.subr.bf16.mxu1 %v1654_v3 }
  0xa1   :  { %v190_v19 = vpop.permute.xlu0 %189  ;;  %1398 = vmatmul.mubr.msk.f32.gmra.mrb[10].mxu0 %vm253_vm4, %v234_v18  ;;  %v210_v20 = vpop.permute.xlu1 %209 }
  0xa2   :  { %v220_v21 = vsel %vm40_vm0, %v155_v16, %v190_v19  ;;  %v238_v22 = vsel %vm231_vm5, %v235_v63, %v237_v17  ;;  %1472 = vmatprep.mubr.msk.f32.mxu0 %vm1655_vm2, %v1653_v0 }
  0xa3   :  { %v225_v23 = vsel %vm140_vm3, %v220_v21, %v210_v20  ;;  %1404 = vmatmul.mubr.msk.f32.gmra.mrb[2].mxu1 %vm253_vm4, %v238_v22 }
  0xa4   :  { %v239_v24 = vrot.slane %v225_v23, 4  ;;  %1406 = vmatprep.mubr.msk.f32.mxu1 %vm1655_vm2, %v1653_v0  ;;  %1538 = vmatpush3.bf16.msra.mxu1 %v1537_v34 }
  0xa5   :  { %1539 = vmatprep.subr.bf16.mxu1 %v1654_v3 }
  0xa6   :  { %v240_v25 = vsel %vm231_vm5, %v237_v17, %v239_v24  ;;  %vm564_vm5 = vcmask 785408  }
  0xa7   :  { %1407 = vmatmul.mubr.msk.f32.gmra.mrb[4].mxu1 %vm253_vm4, %v240_v25  ;;  %vm482_vm4 = vcmask 523264  }
  0xa8   :  { %1433 = vmatprep.mubr.msk.f32.mxu1 %vm1655_vm2, %v1653_v0  ;;  %1541 = vmatpush3.bf16.msra.mxu1 %v1540_v37 }
  0xa9   :  { %1542 = vmatprep.subr.bf16.mxu1 %v1654_v3 }
  0xac   :  { %1544 = vmatpush3.bf16.msra.mxu1 %v1543_v40 }
  0xad   :  { %1545 = vmatprep.subr.bf16.mxu1 %v1654_v3 }
  0xb0   :  { %1547 = vmatpush3.bf16.msra.mxu1 %v1546_v48 }
 0x155   :  { %v343_v42 = vpop.f32.mrb[0].mxu0 }
 0x156   :  { %v344_v43 = vadd.f32 %v1928_v41, %v343_v42  ;;  %v1384_v44 = vpop.f32.mrb[1].mxu0 }
 0x158   :  { %vm387_vm8 = vcmp.ge.f32.partialorder %v344_v43, 0.0  ;;  %v396_v47 = vmul.f32 0.01, %v344_v43 }
 0x159   :  { %v348_v49 = vpop.f32.mrb[2].mxu0 }
 0x15a   :  { %v405_v50 = vsel %vm387_vm8, %v344_v43, %v396_v47  ;;  %v349_v51 = vadd.f32 %v1928_v41, %v348_v49  ;;  %v1387_v52 = vpop.f32.mrb[3].mxu0  ;;  %vm537_vm8 = vcmask 1041408  }
 0x15b   :  { %426 = vst.msk [vmem:[#allocation3 + $0x1] sm:$0xff] %vm414_vm6, %v405_v50 }
 0x15c   :  { %vm388_vm9 = vcmp.ge.f32.partialorder %v349_v51, 0.0  ;;  %v397_v53 = vmul.f32 0.01, %v349_v51 }
 0x15d   :  { %v353_v54 = vpop.f32.mrb[4].mxu0 }
 0x15e   :  { %v406_v55 = vsel %vm388_vm9, %v349_v51, %v397_v53  ;;  %v354_v56 = vadd.f32 %v1928_v41, %v353_v54  ;;  %v1390_v57 = vpop.f32.mrb[5].mxu0  ;;  %vm687_vm9 = vcmask 259072  }
 0x15f   :  { %427 = vst.msk [vmem:[#allocation3 + $0x9] sm:$0xff] %vm414_vm6, %v406_v55 }
 0x160   :  { %vm389_vm10 = vcmp.ge.f32.partialorder %v354_v56, 0.0  ;;  %v398_v58 = vmul.f32 0.01, %v354_v56  ;;  %688 = vst.msk [vmem:[#allocation4 + $0x20] sm:$0x3f] %vm687_vm9, %v1653_v0 }
 0x161   :  { %v358_v59 = vpop.f32.mrb[6].mxu0  ;;  %885 = vst.msk [vmem:[#allocation5 + $0x10] sm:$0x3f] %vm687_vm9, %v1653_v0  ;;  %vm889_vm9 = vcmask 261121  }
 0x162   :  { %v407_v60 = vsel %vm389_vm10, %v354_v56, %v398_v58  ;;  %v359_v61 = vadd.f32 %v1928_v41, %v358_v59  ;;  %v1393_v62 = vpop.f32.mrb[7].mxu0 }
 0x163   :  { %428 = vst.msk [vmem:[#allocation3 + $0x11] sm:$0xff] %vm414_vm6, %v407_v60 }
 0x164   :  { %vm390_vm11 = vcmp.ge.f32.partialorder %v359_v61, 0.0  ;;  %v399_v63 = vmul.f32 0.01, %v359_v61 }
 0x166   :  { %v408_v1 = vsel %vm390_vm11, %v359_v61, %v399_v63  ;;  %v450_v2 = vld [vmem:[#allocation3 + $0x2] ss:$2 sm:$0xff]  ;;  %v444_v4 = vld [vmem:[#allocation3 + $0x1] ss:$2 sm:$0xff] }
 0x167   :  { %429 = vst.msk [vmem:[#allocation3 + $0x19] sm:$0xff] %vm414_vm6, %v408_v1  ;;  %470 = vrot.lane.b32.xlu1 %v450_v2, %s1658_s2  ;;  %458 = vrot.lane.b32.xlu0 %v444_v4, %s1659_s3 }
 0x16d   :  { %v373_v5 = vpop.f32.mrb[0].mxu1 }
 0x16e   :  { %v374_v6 = vadd.f32 %v1928_v41, %v373_v5  ;;  %v1402_v7 = vpop.f32.mrb[1].mxu1  ;;  %v452_v8 = vld [vmem:[#allocation3 + $0x12] ss:$2 sm:$0xff]  ;;  %v446_v9 = vld [vmem:[#allocation3 + $0x11] ss:$2 sm:$0xff] }
 0x16f   :  { %472 = vrot.lane.b32.xlu1 %v452_v8, %s1658_s2  ;;  %460 = vrot.lane.b32.xlu0 %v446_v9, %s1659_s3  ;;  %v440_v47 = vld [vmem:[#allocation3 + $0x10] ss:$2 sm:$0xff] }
 0x170   :  { %vm393_vm12 = vcmp.ge.f32.partialorder %v374_v6, 0.0  ;;  %v402_v10 = vmul.f32 0.01, %v374_v6  ;;  %v363_v11 = vpop.f32.mrb[8].mxu0 }
 0x171   :  { %v364_v12 = vadd.f32 %v1928_v41, %v363_v11  ;;  %v1396_v13 = vpop.f32.mrb[9].mxu0 }
 0x172   :  { %v411_v14 = vsel %vm393_vm12, %v374_v6, %v402_v10 }
 0x173   :  { %435 = vst.msk [vmem:[#allocation3 + $0x32] sm:$0xff] %vm414_vm6, %v411_v14  ;;  %vm391_vm13 = vcmp.ge.f32.partialorder %v364_v12, 0.0  ;;  %v400_v15 = vmul.f32 0.01, %v364_v12  ;;  %v767_v14 = vld [vmem:[%s2263_s5] sm:$0xff] }
 0x174   :  { %v368_v16 = vpop.f32.mrb[10].mxu0 }
 0x175   :  { %v409_v17 = vsel %vm391_vm13, %v364_v12, %v400_v15  ;;  %v369_v18 = vadd.f32 %v1928_v41, %v368_v16  ;;  %v1399_v19 = vpop.f32.mrb[11].mxu0  ;;  %v768_v15 = vld [vmem:[%s2263_s5 + $0x8] sm:$0xff]  ;;  %v769_v16 = vld [vmem:[%s2263_s5 + $0x10] sm:$0xff]  ;;  %vm692_vm13 = vcmask 261122  }
 0x176   :  { %431 = vst.msk [vmem:[#allocation3 + $0x21] sm:$0xf] %vm430_vm14, %v409_v17  ;;  %v378_v20 = vpop.f32.mrb[2].mxu1 }
 0x177   :  { %433 = vst.msk [vmem:[#allocation3 + $0x22] sm:$0xf0] %vm432_vm15, %v409_v17  ;;  %vm392_vm0 = vcmp.ge.f32.partialorder %v369_v18, 0.0  ;;  %v401_v21 = vmul.f32 0.01, %v369_v18  ;;  %v379_v22 = vadd.f32 %v1928_v41, %v378_v20  ;;  %v1405_v23 = vpop.f32.mrb[3].mxu1  ;;  %v1549_v17 = vpack.c.bf16 %v768_v15, %v767_v14 }
 0x178   :  { %v771_v20 = vld [vmem:[%s2263_s5 + $0x20] sm:$0xff]  ;;  %v773_v23 = vld [vmem:[%s2263_s5 + $0x30] sm:$0xff] }
 0x179   :  { %v410_v24 = vsel %vm392_vm0, %v369_v18, %v401_v21  ;;  %vm394_vm1 = vcmp.ge.f32.partialorder %v379_v22, 0.0  ;;  %v403_v25 = vmul.f32 0.01, %v379_v22  ;;  %v770_v18 = vld [vmem:[%s2263_s5 + $0x18] sm:$0xff]  ;;  %1550 = vmatpush3.bf16.msra.mxu0 %v1549_v17  ;;  %v772_v21 = vld [vmem:[%s2263_s5 + $0x28] sm:$0xff] }
 0x17a   :  { %434 = vst.msk [vmem:[#allocation3 + $0x2a] sm:$0xff] %vm414_vm6, %v410_v24  ;;  %v383_v26 = vpop.f32.mrb[4].mxu1  ;;  %v1552_v19 = vpack.c.bf16 %v770_v18, %v769_v16  ;;  %1551 = vmatprep.subr.bf16.mxu0 %v1654_v3  ;;  %v774_v24 = vld [vmem:[%s2263_s5 + $0x38] sm:$0xff] }
 0x17b   :  { %v412_v27 = vsel %vm394_vm1, %v379_v22, %v403_v25  ;;  %v384_v28 = vadd.f32 %v1928_v41, %v383_v26  ;;  %v1408_v29 = vpop.f32.mrb[5].mxu1  ;;  %v438_v41 = vld [vmem:[#allocation3] ss:$2 sm:$0xff]  ;;  %v1555_v22 = vpack.c.bf16 %v772_v21, %v771_v20  ;;  %v1558_v25 = vpack.c.bf16 %v774_v24, %v773_v23 }
 0x17c   :  { %436 = vst.msk [vmem:[#allocation3 + $0x3a] sm:$0xff] %vm414_vm6, %v412_v27  ;;  %v775_v26 = vld [vmem:[%s2263_s5 + $0x40] sm:$0xff]  ;;  %v776_v27 = vld [vmem:[%s2263_s5 + $0x48] sm:$0xff]  ;;  %v777_v29 = vld [vmem:[%s2263_s5 + $0x50] sm:$0xff] }
 0x17d   :  { %vm395_vm3 = vcmp.ge.f32.partialorder %v384_v28, 0.0  ;;  %v404_v30 = vmul.f32 0.01, %v384_v28  ;;  %v454_v31 = vld [vmem:[#allocation3 + $0x22] ss:$2 sm:$0x3]  ;;  %1553 = vmatpush3.bf16.msra.mxu0 %v1552_v19 }
 0x17e   :  { %474 = vrot.lane.b32.xlu1 %v454_v31, %s1658_s2  ;;  %v448_v32 = vld [vmem:[#allocation3 + $0x21] ss:$2 sm:$0x3]  ;;  %v442_v53 = vld [vmem:[#allocation3 + $0x20] ss:$2 sm:$0x3]  ;;  %1554 = vmatprep.subr.bf16.mxu0 %v1654_v3 }
 0x17f   :  { %v413_v33 = vsel %vm395_vm3, %v384_v28, %v404_v30  ;;  %462 = vrot.lane.b32.xlu0 %v448_v32, %s1659_s3  ;;  %v1561_v28 = vpack.c.bf16 %v776_v27, %v775_v26  ;;  %v778_v30 = vld [vmem:[%s2263_s5 + $0x58] sm:$0xff]  ;;  %v1259_v32 = vld [vmem:[%s2264_s4] ss:$0 sm:$0xff] }
 0x180   :  { %437 = vst.msk [vmem:[#allocation3 + $0x42] sm:$0xff] %vm414_vm6, %v413_v33  ;;  %v1564_v31 = vpack.c.bf16 %v778_v30, %v777_v29  ;;  %v929_v29 = vld [vmem:[%s2265_s7 + $0x8] sm:$0xff]  ;;  %v930_v30 = vld [vmem:[%s2265_s7 + $0x10] sm:$0xff] }
 0x181   :  { %v499_v34 = vld [vmem:[#allocation3 + $0x27] ss:$2 sm:$0xff]  ;;  %v493_v35 = vld [vmem:[#allocation3 + $0x26] ss:$2 sm:$0xff]  ;;  %1556 = vmatpush3.bf16.msra.mxu0 %v1555_v22 }
 0x182   :  { %519 = vrot.lane.b32.xlu1 %v499_v34, %s1658_s2  ;;  %v487_v55 = vld [vmem:[#allocation3 + $0x25] ss:$2 sm:$0xff]  ;;  %1557 = vmatprep.subr.bf16.mxu0 %v1654_v3 }
 0x183   :  { %507 = vrot.lane.b32.xlu0 %v493_v35, %s1659_s3 }
 0x185   :  { %1559 = vmatpush3.bf16.msra.mxu0 %v1558_v25 }
 0x186   :  { %1560 = vmatprep.subr.bf16.mxu0 %v1654_v3 }
 0x187   :  { %v501_v36 = vld [vmem:[#allocation3 + $0x37] ss:$2 sm:$0xff]  ;;  %v495_v37 = vld [vmem:[#allocation3 + $0x36] ss:$2 sm:$0xff] }
 0x188   :  { %521 = vrot.lane.b32.xlu1 %v501_v36, %s1658_s2  ;;  %509 = vrot.lane.b32.xlu0 %v495_v37, %s1659_s3  ;;  %v503_v38 = vld [vmem:[#allocation3 + $0x47] ss:$2 sm:$0x3]  ;;  %v497_v39 = vld [vmem:[#allocation3 + $0x46] ss:$2 sm:$0x3] }
 0x189   :  { %v489_v62 = vld [vmem:[#allocation3 + $0x35] ss:$2 sm:$0xff]  ;;  %v491_v7 = vld [vmem:[#allocation3 + $0x45] ss:$2 sm:$0x3]  ;;  %1562 = vmatpush3.bf16.msra.mxu0 %v1561_v28 }
 0x18a   :  { %1563 = vmatprep.subr.bf16.mxu0 %v1654_v3  ;;  %v928_v28 = vld [vmem:[%s2265_s7] sm:$0xff] }
 0x18c   :  { %523 = vrot.lane.b32.xlu1 %v503_v38, %s1658_s2  ;;  %511 = vrot.lane.b32.xlu0 %v497_v39, %s1659_s3 }
 0x18d   :  { %1565 = vmatpush3.bf16.msra.mxu0 %v1564_v31  ;;  %v1566_v31 = vpack.c.bf16 %v929_v29, %v928_v28  ;;  %v1066_v28 = vld [vmem:[%s2267_s9 + $0x88] sm:$0xff]  ;;  %v1049_v29 = vld [vmem:[%s2267_s9] sm:$0xff] }
 0x18f   :  { %1567 = vmatprep.subr.bf16.mxu1 %v1566_v31 }
 0x1d9   :  { %v471_v40 = vpop.permute.xlu1 %470  ;;  %v459_v42 = vpop.permute.xlu0 %458 }
 0x1da   :  { %v479_v43 = vsel %vm414_vm6, %v438_v41, %v459_v42 }
 0x1db   :  { %v483_v44 = vsel %vm482_vm4, %v479_v43, %v471_v40 }
 0x1dc   :  { %1434 = vmatmul.mubr.msk.f32.vlgmr.msra.gmra.mrb[6].mxu1 %vm564_vm5, %v483_v44 }
 0x1dd   :  { %1436 = vmatprep.mubr.msk.f32.mxu1 %vm1655_vm2, %v1653_v0  ;;  %1569 = vmatpush3.bf16.msra.mxu1 %v1566_v31  ;;  %v1050_v31 = vld [vmem:[%s2267_s9 + $0x8] sm:$0xff] }
 0x1e1   :  { %v473_v45 = vpop.permute.xlu1 %472  ;;  %v461_v46 = vpop.permute.xlu0 %460 }
 0x1e2   :  { %v480_v48 = vsel %vm414_vm6, %v440_v47, %v461_v46 }
 0x1e3   :  { %v484_v49 = vsel %vm482_vm4, %v480_v48, %v473_v45 }
 0x1e4   :  { %1437 = vmatmul.mubr.msk.f32.gmra.mrb[8].mxu1 %vm564_vm5, %v484_v49 }
 0x1e5   :  { %1439 = vmatprep.mubr.msk.f32.mxu1 %vm1655_vm2, %v1653_v0 }
 0x1f0   :  { %v475_v50 = vpop.permute.xlu1 %474 }
 0x1f1   :  { %v463_v51 = vpop.permute.xlu0 %462 }
 0x1f2   :  { %v481_v56 = vsel %vm414_vm6, %v442_v53, %v463_v51 }
 0x1f3   :  { %v485_v60 = vsel %vm482_vm4, %v481_v56, %v475_v50 }
 0x1f4   :  { %v520_v52 = vpop.permute.xlu1 %519 }
 0x1f5   :  { %v508_v54 = vpop.permute.xlu0 %507 }
 0x1f6   :  { %v528_v57 = vsel %vm414_vm6, %v487_v55, %v508_v54 }
 0x1f7   :  { %v531_v58 = vsel %vm482_vm4, %v528_v57, %v520_v52 }
 0x1f8   :  { %v538_v59 = vrot.slane %v531_v58, 6 }
 0x1fa   :  { %v522_v61 = vpop.permute.xlu1 %521  ;;  %v510_v63 = vpop.permute.xlu0 %509  ;;  %v544_v1 = vsel %vm537_vm8, %v485_v60, %v538_v59 }
 0x1fb   :  { %v529_v2 = vsel %vm414_vm6, %v489_v62, %v510_v63  ;;  %1440 = vmatmul.mubr.msk.f32.gmra.mrb[10].mxu1 %vm564_vm5, %v544_v1 }
 0x1fc   :  { %v532_v4 = vsel %vm482_vm4, %v529_v2, %v522_v61  ;;  %1442 = vmatprep.mubr.msk.f32.mxu1 %vm1655_vm2, %v1653_v0 }
 0x1fd   :  { %v539_v5 = vrot.slane %v532_v4, 6 }
 0x1fe   :  { %v524_v6 = vpop.permute.xlu1 %523  ;;  %v512_v8 = vpop.permute.xlu0 %511 }
 0x1ff   :  { %v530_v9 = vsel %vm414_vm6, %v491_v7, %v512_v8  ;;  %v540_v10 = vsel %vm537_vm8, %v538_v59, %v539_v5 }
 0x200   :  { %v533_v11 = vsel %vm482_vm4, %v530_v9, %v524_v6  ;;  %1443 = vmatmul.mubr.msk.f32.gmra.mrb[12].mxu1 %vm564_vm5, %v540_v10 }
 0x201   :  { %v541_v12 = vrot.slane %v533_v11, 6  ;;  %1445 = vmatprep.mubr.msk.f32.mxu1 %vm1655_vm2, %v1653_v0 }
 0x203   :  { %v542_v13 = vsel %vm537_vm8, %v539_v5, %v541_v12  ;;  %vm887_vm8 = vcmask 253952  }
 0x204   :  { %1446 = vmatmul.mubr.msk.f32.gmra.mrb[14].mxu1 %vm564_vm5, %v542_v13 }
 0x2af   :  { %v644_v33 = vpop.f32.mrb[6].mxu1 }
 0x2b0   :  { %v645_v34 = vadd.f32 %v1259_v32, %v644_v33  ;;  %v1435_v35 = vpop.f32.mrb[7].mxu1 }
 0x2b1   :  { %v933_v35 = vld [vmem:[%s2265_s7 + $0x28] sm:$0xff] }
 0x2b2   :  { %vm668_vm10 = vcmp.ge.f32.partialorder %v645_v34, 0.0  ;;  %v673_v36 = vmul.f32 0.01, %v645_v34 }
 0x2b4   :  { %v678_v37 = vsel %vm668_vm10, %v645_v34, %v673_v36  ;;  %v932_v34 = vld [vmem:[%s2265_s7 + $0x20] sm:$0xff] }
 0x2b5   :  { %689 = vst.msk [vmem:[#allocation4 + $0x1] sm:$0xff] %vm414_vm6, %v678_v37  ;;  %v1574_v36 = vpack.c.bf16 %v933_v35, %v932_v34  ;;  %v934_v37 = vld [vmem:[%s2265_s7 + $0x30] sm:$0xff] }
 0x2b6   :  { %v1051_v35 = vld [vmem:[%s2267_s9 + $0x10] sm:$0xff] }
 0x2b7   :  { %v649_v38 = vpop.f32.mrb[8].mxu1 }
 0x2b8   :  { %v650_v39 = vadd.f32 %v1259_v32, %v649_v38  ;;  %v1438_v40 = vpop.f32.mrb[9].mxu1  ;;  %v935_v38 = vld [vmem:[%s2265_s7 + $0x38] sm:$0xff] }
 0x2b9   :  { %v1265_v40 = vld [vmem:[%s2266_s6] ss:$0 sm:$0xff] }
 0x2ba   :  { %vm669_vm11 = vcmp.ge.f32.partialorder %v650_v39, 0.0  ;;  %v674_v41 = vmul.f32 0.01, %v650_v39 }
 0x2bc   :  { %v679_v42 = vsel %vm669_vm11, %v650_v39, %v674_v41  ;;  %v1578_v39 = vpack.c.bf16 %v935_v38, %v934_v37  ;;  %v1069_v37 = vld [vmem:[%s2267_s9 + $0xa0] sm:$0xff]  ;;  %v1070_v38 = vld [vmem:[%s2267_s9 + $0xa8] sm:$0xff] }
 0x2bd   :  { %690 = vst.msk [vmem:[#allocation4 + $0x9] sm:$0xff] %vm414_vm6, %v679_v42 }
 0x2c4   :  { %v704_v43 = vld [vmem:[#allocation4 + $0x2] ss:$2 sm:$0xff]  ;;  %v700_v44 = vld [vmem:[#allocation4 + $0x1] ss:$2 sm:$0xff] }
 0x2c5   :  { %717 = vrot.lane.b32.xlu1 %v704_v43, %s1658_s2  ;;  %709 = vrot.lane.b32.xlu0 %v700_v44, %s1659_s3  ;;  %v696_v5 = vld [vmem:[#allocation4] ss:$2 sm:$0xff]  ;;  %v698_v11 = vld [vmem:[#allocation4 + $0x10] ss:$2 sm:$0x1] }
 0x2ce   :  { %v654_v45 = vpop.f32.mrb[10].mxu1 }
 0x2cf   :  { %v655_v46 = vadd.f32 %v1259_v32, %v654_v45  ;;  %v1441_v47 = vpop.f32.mrb[11].mxu1 }
 0x2d1   :  { %vm670_vm12 = vcmp.ge.f32.partialorder %v655_v46, 0.0  ;;  %v675_v48 = vmul.f32 0.01, %v655_v46 }
 0x2d3   :  { %v680_v49 = vsel %vm670_vm12, %v655_v46, %v675_v48  ;;  %v659_v50 = vpop.f32.mrb[12].mxu1 }
 0x2d4   :  { %691 = vst.msk [vmem:[#allocation4 + $0x11] sm:$0x3] %vm424_vm7, %v680_v49  ;;  %v660_v51 = vadd.f32 %v1259_v32, %v659_v50  ;;  %v1444_v52 = vpop.f32.mrb[13].mxu1 }
 0x2d5   :  { %693 = vst.msk [vmem:[#allocation4 + $0x12] sm:$0xfc] %vm692_vm13, %v680_v49  ;;  %v937_v52 = vld [vmem:[%s2265_s7 + $0x48] sm:$0xff] }
 0x2d6   :  { %vm671_vm15 = vcmp.ge.f32.partialorder %v660_v51, 0.0  ;;  %v676_v53 = vmul.f32 0.01, %v660_v51 }
 0x2d7   :  { %v664_v54 = vpop.f32.mrb[14].mxu1 }
 0x2d8   :  { %v681_v55 = vsel %vm671_vm15, %v660_v51, %v676_v53  ;;  %v665_v56 = vadd.f32 %v1259_v32, %v664_v54  ;;  %v1447_v57 = vpop.f32.mrb[15].mxu1  ;;  %v931_v32 = vld [vmem:[%s2265_s7 + $0x18] sm:$0xff]  ;;  %v936_v51 = vld [vmem:[%s2265_s7 + $0x40] sm:$0xff] }
 0x2d9   :  { %694 = vst.msk [vmem:[#allocation4 + $0x1a] sm:$0xff] %vm414_vm6, %v681_v55  ;;  %v1570_v33 = vpack.c.bf16 %v931_v32, %v930_v30  ;;  %v1068_v32 = vld [vmem:[%s2267_s9 + $0x98] sm:$0xff] }
 0x2da   :  { %vm672_vm0 = vcmp.ge.f32.partialorder %v665_v56, 0.0  ;;  %v677_v58 = vmul.f32 0.01, %v665_v56 }
 0x2db   :  { %v706_v59 = vld [vmem:[#allocation4 + $0x12] ss:$2 sm:$0x1]  ;;  %v702_v60 = vld [vmem:[#allocation4 + $0x11] ss:$2 sm:$0x1]  ;;  %1571 = vmatprep.subr.bf16.mxu1 %v1570_v33 }
 0x2dc   :  { %v682_v61 = vsel %vm672_vm0, %v665_v56, %v677_v58  ;;  %719 = vrot.lane.b32.xlu1 %v706_v59, %s1658_s2  ;;  %711 = vrot.lane.b32.xlu0 %v702_v60, %s1659_s3  ;;  %v1582_v56 = vpack.c.bf16 %v937_v52, %v936_v51  ;;  %v938_v58 = vld [vmem:[%s2265_s7 + $0x50] sm:$0xff]  ;;  %v939_v59 = vld [vmem:[%s2265_s7 + $0x58] sm:$0xff] }
 0x2dd   :  { %695 = vst.msk [vmem:[#allocation4 + $0x22] sm:$0xf] %vm430_vm14, %v682_v61  ;;  %vm761_vm14 = vcmask 1040384   ;;  %1573 = vmatpush3.bf16.msra.mxu1 %v1570_v33  ;;  %v1586_v61 = vpack.c.bf16 %v939_v59, %v938_v58  ;;  %v1592_v33 = vpack.c.bf16 %v1050_v31, %v1049_v29  ;;  %v1059_v59 = vld [vmem:[%s2267_s9 + $0x50] sm:$0xff] }
 0x2de   :  { %1575 = vmatprep.subr.bf16.mxu1 %v1574_v36 }
 0x2e0   :  { %v728_v13 = vld [vmem:[#allocation4 + $0x13] ss:$2 sm:$0xff] }
 0x2e1   :  { %1577 = vmatpush3.bf16.msra.mxu1 %v1574_v36  ;;  %v1052_v36 = vld [vmem:[%s2267_s9 + $0x18] sm:$0xff] }
 0x2e2   :  { %1579 = vmatprep.subr.bf16.mxu1 %v1578_v39 }
 0x2e4   :  { %v736_v62 = vld [vmem:[#allocation4 + $0x15] ss:$2 sm:$0xff]  ;;  %v732_v63 = vld [vmem:[#allocation4 + $0x14] ss:$2 sm:$0xff] }
 0x2e5   :  { %749 = vrot.lane.b32.xlu1 %v736_v62, %s1658_s2  ;;  %741 = vrot.lane.b32.xlu0 %v732_v63, %s1659_s3  ;;  %v738_v1 = vld [vmem:[#allocation4 + $0x25] ss:$2 sm:$0x1]  ;;  %v734_v2 = vld [vmem:[#allocation4 + $0x24] ss:$2 sm:$0x1] }
 0x2e6   :  { %v730_v22 = vld [vmem:[#allocation4 + $0x23] ss:$2 sm:$0x1]  ;;  %1581 = vmatpush3.bf16.msra.mxu1 %v1578_v39  ;;  %v1596_v39 = vpack.c.bf16 %v1052_v36, %v1051_v35 }
 0x2e7   :  { %1583 = vmatprep.subr.bf16.mxu1 %v1582_v56 }
 0x2e9   :  { %751 = vrot.lane.b32.xlu1 %v738_v1, %s1658_s2  ;;  %743 = vrot.lane.b32.xlu0 %v734_v2, %s1659_s3 }
 0x2ea   :  { %1585 = vmatpush3.bf16.msra.mxu1 %v1582_v56  ;;  %v1076_v56 = vld [vmem:[%s2267_s9 + $0xd8] sm:$0xff] }
 0x2eb   :  { %1587 = vmatprep.subr.bf16.mxu1 %v1586_v61 }
 0x2ee   :  { %1589 = vmatpush3.bf16.msra.mxu1 %v1586_v61  ;;  %v1077_v61 = vld [vmem:[%s2267_s9 + $0xe0] sm:$0xff] }
 0x2ef   :  { %1622 = vmatprep.subr.bf16.mxu1 %v1654_v3 }
 0x337   :  { %v718_v4 = vpop.permute.xlu1 %717  ;;  %v710_v6 = vpop.permute.xlu0 %709 }
 0x338   :  { %v723_v7 = vsel %vm414_vm6, %v696_v5, %v710_v6 }
 0x339   :  { %v725_v8 = vsel %vm482_vm4, %v723_v7, %v718_v4 }
 0x33a   :  { %1473 = vmatmul.mubr.msk.f32.vlgmr.msra.gmra.mrb[12].mxu0 %vm564_vm5, %v725_v8 }
 0x33b   :  { %1475 = vmatprep.mubr.msk.f32.mxu0 %vm1655_vm2, %v1653_v0 }
 0x34e   :  { %v720_v9 = vpop.permute.xlu1 %719  ;;  %v712_v10 = vpop.permute.xlu0 %711 }
 0x34f   :  { %v724_v15 = vsel %vm414_vm6, %v698_v11, %v712_v10  ;;  %v1082_v10 = vld [vmem:[%s2267_s9 + $0x108] sm:$0xff] }
 0x350   :  { %v726_v19 = vsel %vm482_vm4, %v724_v15, %v720_v9  ;;  %v1081_v9 = vld [vmem:[%s2267_s9 + $0x100] sm:$0xff] }
 0x357   :  { %v750_v12 = vpop.permute.xlu1 %749  ;;  %v742_v14 = vpop.permute.xlu0 %741 }
 0x358   :  { %v755_v16 = vsel %vm414_vm6, %v728_v13, %v742_v14 }
 0x359   :  { %v757_v17 = vsel %vm482_vm4, %v755_v16, %v750_v12 }
 0x35a   :  { %v762_v18 = vrot.slane %v757_v17, 7  ;;  %v1623_v17 = vpack.c.bf16 %v1082_v10, %v1081_v9  ;;  %v1080_v9 = vld [vmem:[%s2267_s9 + $0xf8] sm:$0xff] }
 0x35b   :  { %v752_v20 = vpop.permute.xlu1 %751  ;;  %v744_v21 = vpop.permute.xlu0 %743 }
 0x35c   :  { %v756_v23 = vsel %vm414_vm6, %v730_v22, %v744_v21  ;;  %v766_v24 = vsel %vm761_vm14, %v726_v19, %v762_v18  ;;  %v1083_v19 = vld [vmem:[%s2267_s9 + $0x110] sm:$0xff]  ;;  %v1085_v22 = vld [vmem:[%s2267_s9 + $0x120] sm:$0xff] }
 0x35d   :  { %v758_v25 = vsel %vm482_vm4, %v756_v23, %v752_v20  ;;  %1476 = vmatmul.mubr.msk.f32.gmra.mrb[14].mxu0 %vm564_vm5, %v766_v24  ;;  %v1084_v20 = vld [vmem:[%s2267_s9 + $0x118] sm:$0xff]  ;;  %v1087_v23 = vld [vmem:[%s2267_s9 + $0x130] sm:$0xff] }
 0x35e   :  { %v763_v26 = vrot.slane %v758_v25, 7  ;;  %1478 = vmatprep.mubr.msk.f32.mxu0 %vm1655_vm2, %v1653_v0  ;;  %v1626_v21 = vpack.c.bf16 %v1084_v20, %v1083_v19  ;;  %v1088_v25 = vld [vmem:[%s2267_s9 + $0x138] sm:$0xff] }
 0x360   :  { %v764_v27 = vsel %vm761_vm14, %v762_v18, %v763_v26  ;;  %v1632_v26 = vpack.c.bf16 %v1088_v25, %v1087_v23 }
 0x361   :  { %1479 = vmatmul.mubr.msk.f32.gmra.mrb[16].mxu0 %vm564_vm5, %v764_v27  ;;  %v1065_v27 = vld [vmem:[%s2267_s9 + $0x80] sm:$0xff] }
 0x362   :  { %v1590_v30 = vpack.c.bf16 %v1066_v28, %v1065_v27 }
 0x364   :  { %1591 = vmatprep.subr.bf16.mxu0 %v1590_v30 }
 0x365   :  { %1593 = vmatpush3.bf16.msra.mxu0 %v1592_v33 }
 0x40d   :  { %v860_v41 = vpop.f32.mrb[12].mxu0 }
 0x40e   :  { %v861_v42 = vadd.f32 %v1265_v40, %v860_v41  ;;  %v1474_v43 = vpop.f32.mrb[13].mxu0  ;;  %v1053_v41 = vld [vmem:[%s2267_s9 + $0x20] sm:$0xff] }
 0x40f   :  { %v1071_v43 = vld [vmem:[%s2267_s9 + $0xb0] sm:$0xff] }
 0x410   :  { %vm874_vm1 = vcmp.ge.f32.partialorder %v861_v42, 0.0  ;;  %v877_v44 = vmul.f32 0.01, %v861_v42 }
 0x412   :  { %v880_v45 = vsel %vm874_vm1, %v861_v42, %v877_v44  ;;  %v1054_v42 = vld [vmem:[%s2267_s9 + $0x28] sm:$0xff]  ;;  %v1072_v44 = vld [vmem:[%s2267_s9 + $0xb8] sm:$0xff] }
 0x413   :  { %886 = vst.msk [vmem:[#allocation5 + $0x1] sm:$0xff] %vm414_vm6, %v880_v45  ;;  %v1600_v45 = vpack.c.bf16 %v1054_v42, %v1053_v41 }
 0x41a   :  { %v896_v1 = vld [vmem:[#allocation5 + $0x2] ss:$2 sm:$0x1f] }
 0x41b   :  { %v892_v12 = vld [vmem:[#allocation5] ss:$2 sm:$0x1f] }
 0x430   :  { %v865_v46 = vpop.f32.mrb[14].mxu0 }
 0x431   :  { %v866_v47 = vadd.f32 %v1265_v40, %v865_v46  ;;  %v1477_v48 = vpop.f32.mrb[15].mxu0  ;;  %v1602_v46 = vpack.c.bf16 %v1072_v44, %v1071_v43 }
 0x432   :  { %v1056_v48 = vld [vmem:[%s2267_s9 + $0x38] sm:$0xff] }
 0x433   :  { %vm875_vm3 = vcmp.ge.f32.partialorder %v866_v47, 0.0  ;;  %v878_v49 = vmul.f32 0.01, %v866_v47 }
 0x434   :  { %v870_v50 = vpop.f32.mrb[16].mxu0 }
 0x435   :  { %v881_v53 = vsel %vm875_vm3, %v866_v47, %v878_v49  ;;  %v871_v54 = vadd.f32 %v1265_v40, %v870_v50  ;;  %v1480_v55 = vpop.f32.mrb[17].mxu0  ;;  %v1598_v40 = vpack.c.bf16 %v1070_v38, %v1069_v37  ;;  %v1055_v47 = vld [vmem:[%s2267_s9 + $0x30] sm:$0xff]  ;;  %v1073_v49 = vld [vmem:[%s2267_s9 + $0xc0] sm:$0xff]  ;;  %v1074_v50 = vld [vmem:[%s2267_s9 + $0xc8] sm:$0xff] }
 0x436   :  { %888 = vst.msk [vmem:[#allocation5 + $0x9] sm:$0x1] %vm887_vm8, %v881_v53  ;;  %v1604_v51 = vpack.c.bf16 %v1056_v48, %v1055_v47  ;;  %v1606_v52 = vpack.c.bf16 %v1074_v50, %v1073_v49  ;;  %v1075_v55 = vld [vmem:[%s2267_s9 + $0xd0] sm:$0xff] }
 0x437   :  { %890 = vst.msk [vmem:[#allocation5 + $0xb] sm:$0xfe] %vm889_vm9, %v881_v53  ;;  %vm876_vm10 = vcmp.ge.f32.partialorder %v871_v54, 0.0  ;;  %v879_v57 = vmul.f32 0.01, %v871_v54  ;;  %v1057_v53 = vld [vmem:[%s2267_s9 + $0x40] sm:$0xff]  ;;  %v1610_v58 = vpack.c.bf16 %v1076_v56, %v1075_v55 }
 0x439   :  { %v882_v60 = vsel %vm876_vm10, %v871_v54, %v879_v57  ;;  %v1058_v54 = vld [vmem:[%s2267_s9 + $0x48] sm:$0xff] }
 0x43a   :  { %891 = vst.msk [vmem:[#allocation5 + $0x13] sm:$0x3] %vm424_vm7, %v882_v60  ;;  %vm926_vm7 = vcmask 1044480   ;;  %v1608_v57 = vpack.c.bf16 %v1058_v54, %v1057_v53  ;;  %v1060_v60 = vld [vmem:[%s2267_s9 + $0x58] sm:$0xff] }
 0x43d   :  { %v894_v2 = vld [vmem:[#allocation5 + $0x1] ss:$2 sm:$0x1f] }
 0x441   :  { %v912_v62 = vld [vmem:[#allocation5 + $0xd] ss:$2 sm:$0x1f]  ;;  %v910_v63 = vld [vmem:[#allocation5 + $0xc] ss:$2 sm:$0x1f] }
 0x442   :  { %918 = vrot.lane.b32.xlu1 %v912_v62, %s1658_s2  ;;  %914 = vrot.lane.b32.xlu0 %v910_v63, %s1659_s3  ;;  %v908_v6 = vld [vmem:[#allocation5 + $0xb] ss:$2 sm:$0x1f]  ;;  %v1612_v63 = vpack.c.bf16 %v1060_v60, %v1059_v59 }
 0x443   :  { %v1078_v62 = vld [vmem:[%s2267_s9 + $0xe8] sm:$0xff] }
 0x446   :  { %902 = vrot.lane.b32.xlu1 %v896_v1, %s1658_s2  ;;  %898 = vrot.lane.b32.xlu0 %v894_v2, %s1659_s3  ;;  %v1614_v1 = vpack.c.bf16 %v1078_v62, %v1077_v61  ;;  %v1061_v2 = vld [vmem:[%s2267_s9 + $0x60] sm:$0xff] }
 0x4b4   :  { %v919_v4 = vpop.permute.xlu1 %918  ;;  %v915_v5 = vpop.permute.xlu0 %914 }
 0x4b5   :  { %v921_v7 = vsel %vm414_vm6, %v908_v6, %v915_v5  ;;  %v1269_v6 = vld [vmem:[%s2268_s8] ss:$0 sm:$0xff] }
 0x4b6   :  { %v922_v8 = vsel %vm482_vm4, %v921_v7, %v919_v4  ;;  %v1062_v4 = vld [vmem:[%s2267_s9 + $0x68] sm:$0xff] }
 0x4b7   :  { %v924_v14 = vrot.slane %v922_v8, 3  ;;  %v1616_v5 = vpack.c.bf16 %v1062_v4, %v1061_v2  ;;  %v1079_v8 = vld [vmem:[%s2267_s9 + $0xf0] sm:$0xff] }
 0x4b8   :  { %v903_v11 = vpop.permute.xlu1 %902  ;;  %v899_v13 = vpop.permute.xlu0 %898 }
 0x4b9   :  { %v905_v15 = vsel %vm414_vm6, %v892_v12, %v899_v13  ;;  %v1618_v12 = vpack.c.bf16 %v1080_v9, %v1079_v8  ;;  %v1063_v13 = vld [vmem:[%s2267_s9 + $0x70] sm:$0xff]  ;;  %vm1242_vm6 = vcmask 33792  }
 0x4ba   :  { %v906_v16 = vsel %vm482_vm4, %v905_v15, %v903_v11 }
 0x4bb   :  { %v927_v18 = vsel %vm926_vm7, %v906_v16, %v924_v14 }
 0x4bc   :  { %1505 = vmatprep.mubr.msk.f32.mxu1 %vm564_vm5, %v927_v18  ;;  %v16_v18 = vstv %s2269_s10 }
 0x4bd   :  { %1506 = vmatmul.mubr.msk.f32.vlgmr.msra.gmra.mrb[16].mxu1 %vm564_vm5, %v924_v14  ;;  %v1064_v14 = vld [vmem:[%s2267_s9 + $0x78] sm:$0xff]  ;;  %17 = vst [vmem:[#allocation7] sm:$0x1] %v16_v18 }
 0x4be   :  { %1624 = vmatpush3.bf16.msra.mxu1 %v1623_v17  ;;  %1524 = vmatprep.mubr.msk.f32.mxu1 %vm1655_vm2, %v1653_v0  ;;  %v1086_v0 = vld [vmem:[%s2267_s9 + $0x128] sm:$0xff]  ;;  %vm1028_vm2 = vcmask 517120   ;;  %v1620_v16 = vpack.c.bf16 %v1064_v14, %v1063_v13  ;;  %v1660_v17 = vmov 0  }
 0x4bf   :  { %1625 = vmatprep.subr.bf16.mxu1 %v1654_v3  ;;  %v1629_v24 = vpack.c.bf16 %v1086_v0, %v1085_v22  ;;  %1651 = vset.pattern.permute.xlu1 %v1660_v17 }
 0x4c0   :  { %1652 = vset.pattern.permute.xlu0 %v1660_v17 }
 0x4c2   :  { %1627 = vmatpush3.bf16.msra.mxu1 %v1626_v21 }
 0x4c3   :  { %1628 = vmatprep.subr.bf16.mxu1 %v1654_v3 }
 0x4c4   :  { %v1272_v0 = vld [vmem:[#allocation7] ss:$0 sm:$0xff] }
 0x4c5   :  { %1096 = vperm.xlu1 %1651, %v1272_v0  }
 0x4c6   :  { %1630 = vmatpush3.bf16.msra.mxu1 %v1629_v24 }
 0x4c7   :  { %1631 = vmatprep.subr.bf16.mxu1 %v1654_v3  ;;  %v1067_v3 = vld [vmem:[%s2267_s9 + $0x90] sm:$0xff] }
 0x4c8   :  { %v1594_v34 = vpack.c.bf16 %v1068_v32, %v1067_v3 }
 0x4ca   :  { %1633 = vmatpush3.bf16.msra.mxu1 %v1632_v26  ;;  %1595 = vmatprep.subr.bf16.mxu0 %v1594_v34 }
 0x4cb   :  { %1597 = vmatpush3.bf16.msra.mxu0 %v1596_v39 }
 0x4cc   :  { %1599 = vmatprep.subr.bf16.mxu0 %v1598_v40 }
 0x4cf   :  { %1601 = vmatpush3.bf16.msra.mxu0 %v1600_v45 }
 0x4d0   :  { %1603 = vmatprep.subr.bf16.mxu0 %v1602_v46 }
 0x4d3   :  { %1605 = vmatpush3.bf16.msra.mxu0 %v1604_v51 }
 0x4d4   :  { %1607 = vmatprep.subr.bf16.mxu0 %v1606_v52 }
 0x4d7   :  { %1609 = vmatpush3.bf16.msra.mxu0 %v1608_v57 }
 0x4d8   :  { %1611 = vmatprep.subr.bf16.mxu0 %v1610_v58 }
 0x4db   :  { %1613 = vmatpush3.bf16.msra.mxu0 %v1612_v63 }
 0x4dc   :  { %1615 = vmatprep.subr.bf16.mxu0 %v1614_v1 }
 0x4df   :  { %1617 = vmatpush3.bf16.msra.mxu0 %v1616_v5 }
 0x4e0   :  { %1619 = vmatprep.subr.bf16.mxu0 %v1618_v12 }
 0x4e3   :  { %1621 = vmatpush3.bf16.msra.mxu0 %v1620_v16 }
 0x544   :  { %v1097_v33 = vpop.permute.xlu1 %1096 }
 0x590   :  { %v1507_v7 = vpop.f32.mrb[16].mxu1 }
 0x591   :  { %v1024_v10 = vadd.f32 %v1507_v7, %v1269_v6  ;;  %v1018_v11 = vpop.f32.mrb[17].mxu1 }
 0x592   :  { %v1019_v15 = vadd.f32 %v1269_v6, %v1018_v11 }
 0x593   :  { %1029 = vst.msk [vmem:[#allocation6 + $0x8] sm:$0x3] %vm1028_vm2, %v1024_v10 }
 0x594   :  { %1027 = vst.msk [vmem:[#allocation6] sm:$0xff] %vm482_vm4, %v1019_v15 }
 0x59b   :  { %v1038_v19 = vld [vmem:[#allocation6 + $0x4] ss:$5 sm:$0x3]  ;;  %v1032_v20 = vld [vmem:[#allocation6 + $0x1] ss:$5 sm:$0x3] }
 0x59c   :  { %1525 = vmatmul.mubr.msk.f32.vlgmr.msra.gmra.mrb[18].mxu1 %vm482_vm4, %v1038_v19  ;;  %v1036_v21 = vld [vmem:[#allocation6 + $0x3] ss:$5 sm:$0x3]  ;;  %v1030_v26 = vld [vmem:[#allocation6] ss:$5 sm:$0x3] }
 0x59d   :  { %v1646_v22 = vpack.i.bf16 %v1032_v20, %v1036_v21  ;;  %v1034_v27 = vld [vmem:[#allocation6 + $0x2] ss:$5 sm:$0x3] }
 0x59f   :  { %1647 = vrot.lane.b32.xlu0 %v1646_v22, %s1658_s2 }
 0x611   :  { %v1648_v23 = vpop.permute.xlu0 %1647 }
 0x612   :  { %v1650_v24 = vunpack.i.h.bf16 %v1648_v23  ;;  %v1649_v25 = vunpack.i.l.bf16 %v1648_v23 }
 0x614   :  { %v1047_v28 = vsel %vm482_vm4, %v1030_v26, %v1650_v24  ;;  %v1048_v29 = vsel %vm482_vm4, %v1034_v27, %v1649_v25 }
 0x615   :  { %1166 = vmatprep.mubr.f32.mxu0 %v1048_v29 }
 0x616   :  { %1167 = vmatmul.mubr.f32.vlgmr.msra.gmra.mrb[18].mxu0 %v1047_v28 }
 0x66f   :  { %v1238_v30 = vpop.f32.mrb[18].mxu1 }
 0x670   :  { %v1526_v31 = vpop.f32.mrb[19].mxu1 }
 0x6e9   :  { %v1364_v3 = vpop.f32.mrb[18].mxu0 }
 0x6ea   :  { %v1365_v32 = vpop.f32.mrb[19].mxu0 }
 0x6eb   :  { %v1366_v34 = vadd.f32 %v1365_v32, %v1364_v3 }
 0x6ed   :  { %v1169_v35 = vadd.f32 %v1366_v34, %v1097_v33 }
 0x6ef   :  { %v1239_v36 = vadd.f32 %v1238_v30, %v1169_v35 }
 0x6f1   :  { %1243 = vst.msk [vmem:[%s2270_s11] sm:$0x3] %vm1242_vm6, %v1239_v36 }

</bundles_post_ra>
